<compile_context>
chip_gen: v6e
topology: v6e:2x2x1
jax: 0.10.0
libtpu: 0.0.40
codegen_flags: <defaults>
</compile_context>

<pallas_src>
import jax
import jax.numpy as jnp
from jax.experimental import pallas as pl
from jax.experimental.pallas import tpu as pltpu

LANE = 128
HIDDEN = 10


def sinenet_kernel(w1_ref, b1_ref, w2_ref, b2_ref, x_ref, o_ref):
    # x_ref: (tile_rows, 128) f32 in VMEM; params are tiny f32 arrays in SMEM.
    x = x_ref[...]
    acc = jnp.full(x.shape, b2_ref[0], dtype=jnp.float32)
    # Unrolled over the 10 hidden units: pure VPU FMA + EUP-path sin, no MXU.
    for j in range(HIDDEN):
        acc = acc + w2_ref[j] * jnp.sin(w1_ref[j] * x + b1_ref[j])
    o_ref[...] = acc


def sinenet_forward(x, w1, b1, w2, b2, *, max_tile_rows=512):
    """x: (B, 1) f32; w1, b1, w2: (10,) f32; b2: (1,) f32 -> (B, 1) f32."""
    B = x.shape[0]
    xf = x.reshape(-1)

    # Lane-dense packing: batch maps onto (sublane, lane); pad to a whole number of
    # (tile_rows, 128) tiles so every block satisfies the (8, 128) rule.
    rows = pl.cdiv(B, LANE)
    rows8 = ((rows + 7) // 8) * 8            # sublane multiple of 8
    tile_rows = min(max_tile_rows, rows8)    # big tiles for large B, small otherwise
    n_tiles = pl.cdiv(rows8, tile_rows)
    rows_padded = n_tiles * tile_rows
    total = rows_padded * LANE

    xp = jnp.pad(xf, (0, total - B)).reshape(rows_padded, LANE)

    out = pl.pallas_call(
        sinenet_kernel,
        out_shape=jax.ShapeDtypeStruct((rows_padded, LANE), jnp.float32),
        grid=(n_tiles,),
        in_specs=[
            pl.BlockSpec(memory_space=pltpu.MemorySpace.SMEM),  # w1 (10,)
            pl.BlockSpec(memory_space=pltpu.MemorySpace.SMEM),  # b1 (10,)
            pl.BlockSpec(memory_space=pltpu.MemorySpace.SMEM),  # w2 (10,)
            pl.BlockSpec(memory_space=pltpu.MemorySpace.SMEM),  # b2 (1,)
            pl.BlockSpec((tile_rows, LANE), lambda i: (i, 0)),  # x tile
        ],
        out_specs=pl.BlockSpec((tile_rows, LANE), lambda i: (i, 0)),
        compiler_params=pltpu.CompilerParams(
            dimension_semantics=("parallel",)),
    )(w1, b1, w2, b2, xp)

    return out.reshape(-1)[:B].reshape(B, 1)


def sinenet_ref(x, w1, b1, w2, b2):
    # Pure-JAX reference of the same math (matches torch: sin(fc1(x)) -> fc2).
    h = jnp.sin(x * w1[None, :] + b1[None, :])              # (B, 10)
    return jnp.sum(h * w2[None, :], axis=1, keepdims=True) + b2[0]


def init_params(key):
    # Mimic nn.Linear default init: uniform(-1/sqrt(fan_in), 1/sqrt(fan_in)).
    k1, k2, k3, k4 = jax.random.split(key, 4)
    bound1 = 1.0                      # fc1 fan_in = 1
    w1 = jax.random.uniform(k1, (HIDDEN,), jnp.float32, -bound1, bound1)
    b1 = jax.random.uniform(k2, (HIDDEN,), jnp.float32, -bound1, bound1)
    bound2 = 1.0 / (10.0 ** 0.5)      # fc2 fan_in = 10
    w2 = jax.random.uniform(k3, (HIDDEN,), jnp.float32, -bound2, bound2)
    b2 = jax.random.uniform(k4, (1,), jnp.float32, -bound2, bound2)
    return w1, b1, w2, b2


if __name__ == "__main__":
    key = jax.random.PRNGKey(0)
    kx, kp = jax.random.split(key)
    w1, b1, w2, b2 = init_params(kp)

    # Primary small-shape check (matches the original module's usage).
    batch = 8
    x = jax.random.uniform(kx, (batch, 1), jnp.float32, -jnp.pi, jnp.pi)
    out = jax.block_until_ready(sinenet_forward(x, w1, b1, w2, b2))
    ref = sinenet_ref(x, w1, b1, w2, b2)
    assert out.shape == (batch, 1)
    assert jnp.allclose(out, ref, atol=1e-5, rtol=1e-5)

    # Extra check exercising padding (B not a multiple of 128) and a multi-tile grid.
    batch2 = 2048
    x2 = jax.random.uniform(jax.random.PRNGKey(1), (batch2, 1), jnp.float32,
                            -jnp.pi, jnp.pi)
    out2 = jax.block_until_ready(
        sinenet_forward(x2, w1, b1, w2, b2, max_tile_rows=8))
    ref2 = sinenet_ref(x2, w1, b1, w2, b2)
    assert out2.shape == (batch2, 1)
    assert jnp.allclose(out2, ref2, atol=1e-5, rtol=1e-5)

    print("KERNEL_OK")
</pallas_src>

<mosaic_0001>
module attributes {stable_mosaic.version = 11 : i64} {
  func.func @sinenet_kernel(%arg0: i32, %arg1: memref<10xf32, #tpu.memory_space<smem>>, %arg2: memref<10xf32, #tpu.memory_space<smem>>, %arg3: memref<10xf32, #tpu.memory_space<smem>>, %arg4: memref<1xf32, #tpu.memory_space<smem>>, %arg5: memref<8x128xf32, #tpu.memory_space<vmem>>, %arg6: memref<8x128xf32, #tpu.memory_space<vmem>>) attributes {dimension_semantics = [#tpu.dimension_semantics<parallel>], iteration_bounds = array<i64: 1>, scalar_prefetch = 0 : i64, scratch_operands = 0 : i64, tpu.core_type = #tpu.core_type<tc>, window_params = [{transform_indices = @transform_0, window_bounds = array<i64: 10>}, {transform_indices = @transform_1, window_bounds = array<i64: 10>}, {transform_indices = @transform_2, window_bounds = array<i64: 10>}, {transform_indices = @transform_3, window_bounds = array<i64: 1>}, {transform_indices = @transform_4, window_bounds = array<i64: 8, 128>}, {transform_indices = @transform_5, window_bounds = array<i64: 8, 128>}]} {
    %c0 = arith.constant 0 : index
    %c0_0 = arith.constant 0 : index
    %0 = vector.load %arg5[%c0, %c0_0] : memref<8x128xf32, #tpu.memory_space<vmem>>, vector<8x128xf32>
    %c0_1 = arith.constant 0 : index
    %1 = memref.load %arg4[%c0_1] : memref<1xf32, #tpu.memory_space<smem>>
    %2 = vector.broadcast %1 : f32 to vector<8x128xf32>
    %c0_2 = arith.constant 0 : index
    %3 = memref.load %arg3[%c0_2] : memref<10xf32, #tpu.memory_space<smem>>
    %c0_3 = arith.constant 0 : index
    %4 = memref.load %arg1[%c0_3] : memref<10xf32, #tpu.memory_space<smem>>
    %5 = vector.broadcast %4 : f32 to vector<8x128xf32>
    %6 = arith.mulf %5, %0 : vector<8x128xf32>
    %c0_4 = arith.constant 0 : index
    %7 = memref.load %arg2[%c0_4] : memref<10xf32, #tpu.memory_space<smem>>
    %8 = vector.broadcast %7 : f32 to vector<8x128xf32>
    %9 = arith.addf %6, %8 : vector<8x128xf32>
    %10 = math.sin %9 : vector<8x128xf32>
    %11 = vector.broadcast %3 : f32 to vector<8x128xf32>
    %12 = arith.mulf %11, %10 : vector<8x128xf32>
    %13 = arith.addf %2, %12 : vector<8x128xf32>
    %c1 = arith.constant 1 : index
    %14 = memref.load %arg3[%c1] : memref<10xf32, #tpu.memory_space<smem>>
    %c1_5 = arith.constant 1 : index
    %15 = memref.load %arg1[%c1_5] : memref<10xf32, #tpu.memory_space<smem>>
    %16 = vector.broadcast %15 : f32 to vector<8x128xf32>
    %17 = arith.mulf %16, %0 : vector<8x128xf32>
    %c1_6 = arith.constant 1 : index
    %18 = memref.load %arg2[%c1_6] : memref<10xf32, #tpu.memory_space<smem>>
    %19 = vector.broadcast %18 : f32 to vector<8x128xf32>
    %20 = arith.addf %17, %19 : vector<8x128xf32>
    %21 = math.sin %20 : vector<8x128xf32>
    %22 = vector.broadcast %14 : f32 to vector<8x128xf32>
    %23 = arith.mulf %22, %21 : vector<8x128xf32>
    %24 = arith.addf %13, %23 : vector<8x128xf32>
    %c2 = arith.constant 2 : index
    %25 = memref.load %arg3[%c2] : memref<10xf32, #tpu.memory_space<smem>>
    %c2_7 = arith.constant 2 : index
    %26 = memref.load %arg1[%c2_7] : memref<10xf32, #tpu.memory_space<smem>>
    %27 = vector.broadcast %26 : f32 to vector<8x128xf32>
    %28 = arith.mulf %27, %0 : vector<8x128xf32>
    %c2_8 = arith.constant 2 : index
    %29 = memref.load %arg2[%c2_8] : memref<10xf32, #tpu.memory_space<smem>>
    %30 = vector.broadcast %29 : f32 to vector<8x128xf32>
    %31 = arith.addf %28, %30 : vector<8x128xf32>
    %32 = math.sin %31 : vector<8x128xf32>
    %33 = vector.broadcast %25 : f32 to vector<8x128xf32>
    %34 = arith.mulf %33, %32 : vector<8x128xf32>
    %35 = arith.addf %24, %34 : vector<8x128xf32>
    %c3 = arith.constant 3 : index
    %36 = memref.load %arg3[%c3] : memref<10xf32, #tpu.memory_space<smem>>
    %c3_9 = arith.constant 3 : index
    %37 = memref.load %arg1[%c3_9] : memref<10xf32, #tpu.memory_space<smem>>
    %38 = vector.broadcast %37 : f32 to vector<8x128xf32>
    %39 = arith.mulf %38, %0 : vector<8x128xf32>
    %c3_10 = arith.constant 3 : index
    %40 = memref.load %arg2[%c3_10] : memref<10xf32, #tpu.memory_space<smem>>
    %41 = vector.broadcast %40 : f32 to vector<8x128xf32>
    %42 = arith.addf %39, %41 : vector<8x128xf32>
    %43 = math.sin %42 : vector<8x128xf32>
    %44 = vector.broadcast %36 : f32 to vector<8x128xf32>
    %45 = arith.mulf %44, %43 : vector<8x128xf32>
    %46 = arith.addf %35, %45 : vector<8x128xf32>
    %c4 = arith.constant 4 : index
    %47 = memref.load %arg3[%c4] : memref<10xf32, #tpu.memory_space<smem>>
    %c4_11 = arith.constant 4 : index
    %48 = memref.load %arg1[%c4_11] : memref<10xf32, #tpu.memory_space<smem>>
    %49 = vector.broadcast %48 : f32 to vector<8x128xf32>
    %50 = arith.mulf %49, %0 : vector<8x128xf32>
    %c4_12 = arith.constant 4 : index
    %51 = memref.load %arg2[%c4_12] : memref<10xf32, #tpu.memory_space<smem>>
    %52 = vector.broadcast %51 : f32 to vector<8x128xf32>
    %53 = arith.addf %50, %52 : vector<8x128xf32>
    %54 = math.sin %53 : vector<8x128xf32>
    %55 = vector.broadcast %47 : f32 to vector<8x128xf32>
    %56 = arith.mulf %55, %54 : vector<8x128xf32>
    %57 = arith.addf %46, %56 : vector<8x128xf32>
    %c5 = arith.constant 5 : index
    %58 = memref.load %arg3[%c5] : memref<10xf32, #tpu.memory_space<smem>>
    %c5_13 = arith.constant 5 : index
    %59 = memref.load %arg1[%c5_13] : memref<10xf32, #tpu.memory_space<smem>>
    %60 = vector.broadcast %59 : f32 to vector<8x128xf32>
    %61 = arith.mulf %60, %0 : vector<8x128xf32>
    %c5_14 = arith.constant 5 : index
    %62 = memref.load %arg2[%c5_14] : memref<10xf32, #tpu.memory_space<smem>>
    %63 = vector.broadcast %62 : f32 to vector<8x128xf32>
    %64 = arith.addf %61, %63 : vector<8x128xf32>
    %65 = math.sin %64 : vector<8x128xf32>
    %66 = vector.broadcast %58 : f32 to vector<8x128xf32>
    %67 = arith.mulf %66, %65 : vector<8x128xf32>
    %68 = arith.addf %57, %67 : vector<8x128xf32>
    %c6 = arith.constant 6 : index
    %69 = memref.load %arg3[%c6] : memref<10xf32, #tpu.memory_space<smem>>
    %c6_15 = arith.constant 6 : index
    %70 = memref.load %arg1[%c6_15] : memref<10xf32, #tpu.memory_space<smem>>
    %71 = vector.broadcast %70 : f32 to vector<8x128xf32>
    %72 = arith.mulf %71, %0 : vector<8x128xf32>
    %c6_16 = arith.constant 6 : index
    %73 = memref.load %arg2[%c6_16] : memref<10xf32, #tpu.memory_space<smem>>
    %74 = vector.broadcast %73 : f32 to vector<8x128xf32>
    %75 = arith.addf %72, %74 : vector<8x128xf32>
    %76 = math.sin %75 : vector<8x128xf32>
    %77 = vector.broadcast %69 : f32 to vector<8x128xf32>
    %78 = arith.mulf %77, %76 : vector<8x128xf32>
    %79 = arith.addf %68, %78 : vector<8x128xf32>
    %c7 = arith.constant 7 : index
    %80 = memref.load %arg3[%c7] : memref<10xf32, #tpu.memory_space<smem>>
    %c7_17 = arith.constant 7 : index
    %81 = memref.load %arg1[%c7_17] : memref<10xf32, #tpu.memory_space<smem>>
    %82 = vector.broadcast %81 : f32 to vector<8x128xf32>
    %83 = arith.mulf %82, %0 : vector<8x128xf32>
    %c7_18 = arith.constant 7 : index
    %84 = memref.load %arg2[%c7_18] : memref<10xf32, #tpu.memory_space<smem>>
    %85 = vector.broadcast %84 : f32 to vector<8x128xf32>
    %86 = arith.addf %83, %85 : vector<8x128xf32>
    %87 = math.sin %86 : vector<8x128xf32>
    %88 = vector.broadcast %80 : f32 to vector<8x128xf32>
    %89 = arith.mulf %88, %87 : vector<8x128xf32>
    %90 = arith.addf %79, %89 : vector<8x128xf32>
    %c8 = arith.constant 8 : index
    %91 = memref.load %arg3[%c8] : memref<10xf32, #tpu.memory_space<smem>>
    %c8_19 = arith.constant 8 : index
    %92 = memref.load %arg1[%c8_19] : memref<10xf32, #tpu.memory_space<smem>>
    %93 = vector.broadcast %92 : f32 to vector<8x128xf32>
    %94 = arith.mulf %93, %0 : vector<8x128xf32>
    %c8_20 = arith.constant 8 : index
    %95 = memref.load %arg2[%c8_20] : memref<10xf32, #tpu.memory_space<smem>>
    %96 = vector.broadcast %95 : f32 to vector<8x128xf32>
    %97 = arith.addf %94, %96 : vector<8x128xf32>
    %98 = math.sin %97 : vector<8x128xf32>
    %99 = vector.broadcast %91 : f32 to vector<8x128xf32>
    %100 = arith.mulf %99, %98 : vector<8x128xf32>
    %101 = arith.addf %90, %100 : vector<8x128xf32>
    %c9 = arith.constant 9 : index
    %102 = memref.load %arg3[%c9] : memref<10xf32, #tpu.memory_space<smem>>
    %c9_21 = arith.constant 9 : index
    %103 = memref.load %arg1[%c9_21] : memref<10xf32, #tpu.memory_space<smem>>
    %104 = vector.broadcast %103 : f32 to vector<8x128xf32>
    %105 = arith.mulf %104, %0 : vector<8x128xf32>
    %c9_22 = arith.constant 9 : index
    %106 = memref.load %arg2[%c9_22] : memref<10xf32, #tpu.memory_space<smem>>
    %107 = vector.broadcast %106 : f32 to vector<8x128xf32>
    %108 = arith.addf %105, %107 : vector<8x128xf32>
    %109 = math.sin %108 : vector<8x128xf32>
    %110 = vector.broadcast %102 : f32 to vector<8x128xf32>
    %111 = arith.mulf %110, %109 : vector<8x128xf32>
    %112 = arith.addf %101, %111 : vector<8x128xf32>
    %c0_23 = arith.constant 0 : index
    %c0_24 = arith.constant 0 : index
    %113 = vector.load %arg6[%c0_23, %c0_24] : memref<8x128xf32, #tpu.memory_space<vmem>>, vector<8x128xf32>
    tpu.vector_store %arg6[%c0_23, %c0_24], %112 {strides = array<i32>} : memref<8x128xf32, #tpu.memory_space<vmem>>, vector<8x128xf32>,
    return
  }
  func.func @transform_0(%arg0: i32) -> i32 {
    %c0_i32 = arith.constant 0 : i32
    %c0_i32_0 = arith.constant 0 : i32
    return %c0_i32 : i32
  }
  func.func @transform_1(%arg0: i32) -> i32 {
    %c0_i32 = arith.constant 0 : i32
    %c0_i32_0 = arith.constant 0 : i32
    return %c0_i32 : i32
  }
  func.func @transform_2(%arg0: i32) -> i32 {
    %c0_i32 = arith.constant 0 : i32
    %c0_i32_0 = arith.constant 0 : i32
    return %c0_i32 : i32
  }
  func.func @transform_3(%arg0: i32) -> i32 {
    %c0_i32 = arith.constant 0 : i32
    %c0_i32_0 = arith.constant 0 : i32
    return %c0_i32 : i32
  }
  func.func @transform_4(%arg0: i32) -> (i32, i32) {
    %c0_i32 = arith.constant 0 : i32
    %c0_i32_0 = arith.constant 0 : i32
    return %arg0, %c0_i32 : i32, i32
  }
  func.func @transform_5(%arg0: i32) -> (i32, i32) {
    %c0_i32 = arith.constant 0 : i32
    %c0_i32_0 = arith.constant 0 : i32
    return %arg0, %c0_i32 : i32, i32
  }
}

</mosaic_0001>

<bundles_post_ra>
// kernel: tpu_custom_call.1
= control target key start
LH: loop header
LB: loop body
LE: loop exit
PB: predicated region body
PF: predicated region fallthrough
CT: control target
= control target key end

     0   :  { %11 = vsyncpa [#allocation6], 0  ;;  %s2670_s0 = inlined_call_operand.vmem [shape: f32[10], index: 0, kind: input, shape index: {}]   ;;  %s2671_s1 = inlined_call_operand.vmem [shape: f32[10], index: 1, kind: input, shape index: {}]   ;;  %s2672_s2 = inlined_call_operand.vmem [shape: f32[10], index: 2, kind: input, shape index: {}]   ;;  %s2673_s3 = inlined_call_operand.<no memory space> [shape: f32[1], index: 3, kind: input, shape index: {}]   ;;  %s2674_s4 = inlined_call_operand.hbm [shape: f32[8,128], index: 4, kind: input, shape index: {}]   ;;  %s2675_s5 = inlined_call_operand.hbm [shape: f32[8,128], index: 5, kind: output, shape index: {}]  }
   0x1   :  { %12 = vsyncpa [#allocation8], 0 }
   0x2   :  { %13 = vsyncpa [#allocation4], 0  ;;  %s31_s20 = sshll.u32 %s2671_s1, 4  ;;  %s32_s20 = int_to_ptr.vmem [resolvable:$true] %s31_s20 }
   0x3   :  { %14 = vsyncpa [#allocation5], 0  ;;  %s21_s23 = sshll.u32 %s2670_s0, 4  ;;  %s1390_s24 = scalar_lea.vmem %s32_s20, 16  ;;  %s22_s23 = int_to_ptr.vmem [resolvable:$true] %s21_s23 }
   0x4   :  { %p1391_p0 = scmp.ne.s32.totalorder %s32_s20, %s1390_s24  ;;  %p1395_p1 = scmp.lt.s32.totalorder %s32_s20, %s32_s20 }
   0x5   :  { %p1396_p2 = scmp.lt.s32.totalorder %s1390_s24, %s1390_s24 }
   0x7   :  { %p1397_p3 = por %p1396_p2, %p1395_p1 }
   0x9   :  { %p1398_p4 = pnand %p1397_p3, %p1391_p0 }
   0xb   :  { %1401 = shalt.err (!%p1398_p4)
}
   0xc   :  { %s1474_s25 = smov [#allocation7]   ;;  %s1402_s26 = scalar_lea.vmem %s22_s23, 16 }
   0xd   :  { %34 = dma.vmem_to_smem %s32_s20, 16, %s1474_s25, [#allocation8]  }
   0xe   :  { %p1403_p5 = scmp.ne.s32.totalorder %s22_s23, %s1402_s26  ;;  %p1407_p6 = scmp.lt.s32.totalorder %s22_s23, %s22_s23 }
   0xf   :  { %p1408_p7 = scmp.lt.s32.totalorder %s1402_s26, %s1402_s26 }
  0x11   :  { %p1409_p8 = por %p1408_p7, %p1407_p6 }
  0x13   :  { %p1410_p9 = pnand %p1409_p8, %p1403_p5 }
  0x15   :  { %1413 = shalt.err (!%p1410_p9)
}
  0x16   :  { %s1475_s1 = smov [#allocation3]   ;;  %s41_s28 = sshll.u32 %s2672_s2, 4  ;;  %s42_s28 = int_to_ptr.vmem [resolvable:$true] %s41_s28 }
  0x17   :  { %24 = dma.vmem_to_smem %s22_s23, 16, %s1475_s1, [#allocation6]  }
  0x18   :  { %s1414_s29 = scalar_lea.vmem %s42_s28, 16  ;;  %p1419_p11 = scmp.lt.s32.totalorder %s42_s28, %s42_s28 }
  0x19   :  { %p1415_p10 = scmp.ne.s32.totalorder %s42_s28, %s1414_s29  ;;  %p1420_p12 = scmp.lt.s32.totalorder %s1414_s29, %s1414_s29 }
  0x1b   :  { %p1421_p13 = por %p1420_p12, %p1419_p11 }
  0x1d   :  { %p1422_p0 = pnand %p1421_p13, %p1415_p10 }
  0x1f   :  { %1425 = shalt.err (!%p1422_p0)
}
  0x20   :  { %s1476_s30 = smov [#allocation9]   ;;  %s1477_s6 = smov [#allocation10]  }
  0x21   :  { %44 = dma.vmem_to_smem %s42_s28, 16, %s1476_s30, [#allocation8]  }
  0x22   :  { %s53_s7 = sshll.u32 %s1477_s6, 4  ;;  %s54_s7 = int_to_ptr.vmem [resolvable:$true] %s53_s7 }
  0x23   :  { %s1434_s8 = scalar_lea.vmem %s54_s7, 128  ;;  %p1439_p2 = scmp.lt.s32.totalorder %s54_s7, %s54_s7 }
  0x24   :  { %p1435_p1 = scmp.ne.s32.totalorder %s54_s7, %s1434_s8  ;;  %p1440_p3 = scmp.lt.s32.totalorder %s1434_s8, %s1434_s8 }
  0x26   :  { %p1441_p4 = por %p1440_p3, %p1439_p2 }
  0x28   :  { %p1442_p5 = pnand %p1441_p4, %p1435_p1 }
  0x2a   :  { %1445 = shalt.err (!%p1442_p5)
}
  0x2b   :  { %56 = dma.hbm_to_vmem [thread:$0]  %s2674_s4, 128, %s54_s7, [#allocation4]  }
  0x2c   :  { %1466 = dma.done.wait [#allocation6], 16  }
  0x2d   :  { %1467 = vsyncadd [#allocation6], 4294967280 }
  0x2e   :  { %1468 = dma.done.wait [#allocation8], 32  }
  0x2f   :  { %1469 = vsyncadd [#allocation8], 4294967264 }
  0x30   :  { %1470 = dma.done.wait [#allocation4], 128  }
  0x31   :  { %1471 = vsyncadd [#allocation4], 4294967168 }
  0x32   :  { %69 = sfence }
  0x33   :  { %s74_s10 = sld [smem:[#allocation3]]  ;;  %v1527_v0 = vld [vmem:[#allocation10] sm:$0xff]  ;;  %v2685_v19 = vmov 2102212464   ;;  %v2680_v21 = vmov 920167782  }
  0x34   :  { %s77_s11 = sld [smem:[#allocation7]]  ;;  %v2683_v26 = vmov 1326507024   ;;  %v1481_v28 = vmov 683565275  }
  0x35   :  { %s1236_s12 = sld [smem:[#allocation3 + $0x1]]  ;;  %v2690_v30 = vmov 2475754826   ;;  %v2687_v34 = vmov 2131351028  }
  0x36   :  { %s1237_s13 = sld [smem:[#allocation7 + $0x1]] }
  0x37   :  { %s1542_s4 = sld [smem:[#allocation3 + $0x2]] }
  0x38   :  { %s1244_s14 = sld [smem:[#allocation7 + $0x2]] }
  0x39   :  { %v75_v1 = vstv %s74_s10  ;;  %s1573_s15 = sld [smem:[#allocation3 + $0x3]] }
  0x3a   :  { %v76_v2 = vmul.f32 %v75_v1, %v1527_v0  ;;  %v78_v3 = vstv %s77_s11  ;;  %s1586_s16 = sld [smem:[#allocation7 + $0x3]] }
  0x3b   :  { %v189_v5 = vstv %s1236_s12  ;;  %s1632_s17 = sld [smem:[#allocation3 + $0x4]] }
  0x3c   :  { %v1530_v4 = vadd.f32 %v78_v3, %v76_v2  ;;  %v190_v6 = vmul.f32 %v189_v5, %v1527_v0  ;;  %v192_v8 = vstv %s1237_s13  ;;  %s1645_s18 = sld [smem:[#allocation7 + $0x4]] }
  0x3d   :  { %v303_v47 = vstv %s1542_s4  ;;  %s1732_s19 = sld [smem:[#allocation3 + $0x5]]  ;;  %s1484_s4 = smov [#allocation11]  }
  0x3e   :  { %v83_v7 = vand.u32 2139095040, %v1530_v4  ;;  %v1534_v10 = vadd.f32 %v192_v8, %v190_v6  ;;  %v80_v23 = vand.u32 2147483647, %v1530_v4  ;;  %v304_v53 = vmul.f32 %v303_v47, %v1527_v0  ;;  %s1759_s20 = sld [smem:[#allocation7 + $0x5]] }
  0x3f   :  { %v306_v56 = vstv %s1244_s14  ;;  %s1840_s21 = sld [smem:[#allocation3 + $0x6]]  ;;  %s1220_s14 = sshll.u32 %s1484_s4, 4  ;;  %s1221_s14 = int_to_ptr.vmem [resolvable:$true] %s1220_s14 }
  0x40   :  { %v84_v9 = vshrl.u32 %v83_v7, 23  ;;  %v197_v13 = vand.u32 2139095040, %v1534_v10  ;;  %v87_v39 = vand.u32 8388607, %v80_v23  ;;  %v1563_v60 = vadd.f32 %v306_v56, %v304_v53  ;;  %s1847_s22 = sld [smem:[#allocation9]]  ;;  %p1451_p7 = scmp.lt.s32.totalorder %s1221_s14, %s1221_s14 }
  0x41   :  { %s1860_s23 = sld [smem:[#allocation7 + $0x6]] }
  0x42   :  { %v1231_v11 = vadd.s32 4294967169, %v84_v9  ;;  %v198_v16 = vshrl.u32 %v197_v13, 23  ;;  %v88_v45 = vor.u32 8388608, %v87_v39  ;;  %v311_v9 = vand.u32 2139095040, %v1563_v60  ;;  %s1937_s26 = sld [smem:[#allocation9 + $0x1]] }
  0x43   :  { %s1942_s1 = sld [smem:[#allocation9 + $0x2]] }
  0x44   :  { %v90_v12 = vadd.s32 1, %v1231_v11  ;;  %v1238_v18 = vadd.s32 4294967169, %v198_v16  ;;  %v128_v54 = vshll.u32 %v88_v45, 8  ;;  %v194_v11 = vand.u32 2147483647, %v1534_v10  ;;  %s2005_s0 = sld [smem:[#allocation3 + $0x7]] }
  0x45   :  { %v420_v45 = vstv %s1586_s16  ;;  %s2039_s27 = sld [smem:[#allocation7 + $0x7]] }
  0x46   :  { %vm91_vm0 = vcmp.gt.s32.totalorder %v90_v12, 0  ;;  %v204_v32 = vadd.s32 1, %v1238_v18  ;;  %s2068_s28 = sld [smem:[#allocation9 + $0x3]] }
  0x47   :  { %v92_v14 = vsel %vm91_vm0, %v90_v12, 0  ;;  %s2114_s29 = sld [smem:[#allocation3 + $0x8]] }
  0x48   :  { %v94_v15 = vand.u32 31, %v92_v14  ;;  %v93_v24 = vshrl.u32 %v92_v14, 5  ;;  %vm205_vm2 = vcmp.gt.s32.totalorder %v204_v32, 0  ;;  %s2136_s30 = sld [smem:[#allocation7 + $0x8]] }
  0x49   :  { %v206_v48 = vsel %vm205_vm2, %v204_v32, 0  ;;  %s2245_s6 = sld [smem:[#allocation3 + $0x9]] }
  0x4a   :  { %v95_v17 = vsub.s32 32, %v94_v15  ;;  %v106_v20 = vshll.u32 %v2685_v19, %v94_v15  ;;  %v109_v25 = vshll.u32 %v2680_v21, %v94_v15  ;;  %v97_v29 = vshll.u32 %v1481_v28, %v94_v15  ;;  %s2277_s7 = sld [smem:[#allocation7 + $0x9]] }
  0x4b   :  { %v100_v31 = vshll.u32 %v2690_v30, %v94_v15  ;;  %v103_v36 = vshll.u32 %v2687_v34, %v94_v15  ;;  %vm115_vm1 = vcmp.lt.s32.totalorder %v93_v24, 4  ;;  %vm112_vm3 = vcmp.lt.s32.totalorder %v93_v24, 1  ;;  %s2605_s9 = sld [smem:[#allocation9 + $0x5]] }
  0x4c   :  { %v107_v22 = vshrl.u32 %v2680_v21, %v95_v17  ;;  %v110_v27 = vshrl.u32 %v2683_v26, %v95_v17  ;;  %v98_v33 = vshrl.u32 %v2690_v30, %v95_v17  ;;  %v101_v35 = vshrl.u32 %v2687_v34, %v95_v17  ;;  %s2633_s10 = sld [smem:[#allocation9 + $0x6]] }
  0x4d   :  { %v104_v37 = vshrl.u32 %v2685_v19, %v95_v17  ;;  %vm114_vm4 = vcmp.lt.s32.totalorder %v93_v24, 3  ;;  %vm113_vm5 = vcmp.lt.s32.totalorder %v93_v24, 2  ;;  %v208_v55 = vand.u32 31, %v206_v48  ;;  %s2649_s11 = sld [smem:[#allocation9 + $0x7]] }
  0x4e   :  { %v108_v38 = vor.u32 %v107_v22, %v106_v20  ;;  %v111_v40 = vor.u32 %v110_v27, %v109_v25  ;;  %v99_v41 = vor.u32 %v98_v33, %v97_v29  ;;  %v102_v42 = vor.u32 %v101_v35, %v100_v31  ;;  %s1284_s12 = sld [smem:[#allocation9 + $0x8]] }
  0x4f   :  { %v105_v43 = vor.u32 %v104_v37, %v103_v36  ;;  %v96_v59 = vshrl.u32 %v1481_v28, %v95_v17  ;;  %v209_v1 = vsub.s32 32, %v208_v55  ;;  %v220_v7 = vshll.u32 %v2685_v19, %v208_v55  ;;  %s1291_s13 = sld [smem:[#allocation9 + $0x9]] }
  0x50   :  { %v121_v44 = vsel %vm115_vm1, %v108_v38, 920167782  ;;  %v125_v46 = vsel %vm115_vm1, %v111_v40, 1326507024  ;;  %v120_v49 = vsel %vm112_vm3, %v99_v41, %v102_v42  ;;  %v207_v12 = vshrl.u32 %v206_v48, 5 }
  0x51   :  { %v122_v50 = vsel %vm114_vm4, %v105_v43, %v121_v44  ;;  %v124_v51 = vsel %vm112_vm3, %v102_v42, %v105_v43  ;;  %v126_v52 = vsel %vm114_vm4, %v108_v38, %v125_v46  ;;  %v117_v61 = vsel %vm115_vm1, %v105_v43, 2102212464 }
  0x52   :  { %v123_v57 = vsel %vm113_vm5, %v120_v49, %v122_v50  ;;  %v127_v58 = vsel %vm113_vm5, %v124_v51, %v126_v52  ;;  %v116_v5 = vsel %vm112_vm3, %v96_v59, %v99_v41  ;;  %v118_v6 = vsel %vm114_vm4, %v102_v42, %v117_v61 }
  0x53   :  { %v1566_v62 = vmul.u32.u64.low %v128_v54, %v123_v57  ;;  %v1567_v63 = vmul.u32.u64.high %v128_v54, %v123_v57, %v1566_v62  ;;  %v1570_v2 = vmul.u32.u64.low %v128_v54, %v127_v58  ;;  %v1571_v3 = vmul.u32.u64.high %v128_v54, %v127_v58, %v1570_v2 }
  0x54   :  { %v221_v8 = vshrl.u32 %v2680_v21, %v209_v1  ;;  %v223_v13 = vshll.u32 %v2680_v21, %v208_v55  ;;  %v224_v14 = vshrl.u32 %v2683_v26, %v209_v1  ;;  %v119_v15 = vsel %vm113_vm5, %v116_v5, %v118_v6 }
  0x55   :  { %v211_v16 = vshll.u32 %v1481_v28, %v208_v55  ;;  %v212_v17 = vshrl.u32 %v2690_v30, %v209_v1  ;;  %v214_v18 = vshll.u32 %v2690_v30, %v208_v55  ;;  %v215_v20 = vshrl.u32 %v2687_v34, %v209_v1 }
  0x56   :  { %v217_v22 = vshll.u32 %v2687_v34, %v208_v55  ;;  %v218_v25 = vshrl.u32 %v2685_v19, %v209_v1  ;;  %v138_v27 = vadd.s32 1, %v1567_v63  ;;  %v222_v29 = vor.u32 %v221_v8, %v220_v7 }
  0x57   :  { %v312_v24 = vshrl.u32 %v311_v9, 23  ;;  %vm137_vm6 = vc.u32 %v1571_v3, %v1566_v62  ;;  %v201_v31 = vand.u32 8388607, %v194_v11  ;;  %v225_v32 = vor.u32 %v224_v14, %v223_v13 }
  0x58   :  { %vm229_vm7 = vcmp.lt.s32.totalorder %v207_v12, 4  ;;  %v135_v33 = vmul.u32 %v128_v54, %v119_v15  ;;  %v417_v35 = vstv %s1573_s15  ;;  %v213_v36 = vor.u32 %v212_v17, %v211_v16  ;;  %s1446_s15 = scalar_lea.vmem %s1221_s14, 128 }
  0x59   :  { %v216_v37 = vor.u32 %v215_v20, %v214_v18  ;;  %v219_v38 = vor.u32 %v218_v25, %v217_v22  ;;  %vm226_vm8 = vcmp.lt.s32.totalorder %v207_v12, 1  ;;  %v139_v39 = vsel %vm137_vm6, %v138_v27, %v1567_v63  ;;  %p1447_p6 = scmp.ne.s32.totalorder %s1221_s14, %s1446_s15  ;;  %p1452_p8 = scmp.lt.s32.totalorder %s1446_s15, %s1446_s15 }
  0x5a   :  { %vm228_vm9 = vcmp.lt.s32.totalorder %v207_v12, 3  ;;  %v235_v40 = vsel %vm229_vm7, %v222_v29, 920167782  ;;  %v1245_v41 = vadd.s32 4294967169, %v312_v24  ;;  %v202_v42 = vor.u32 8388608, %v201_v31 }
  0x5b   :  { %v239_v43 = vsel %vm229_vm7, %v225_v32, 1326507024  ;;  %v418_v44 = vmul.f32 %v417_v35, %v1527_v0  ;;  %v140_v46 = vadd.s32 %v139_v39, %v135_v33  ;;  %vm227_vm10 = vcmp.lt.s32.totalorder %v207_v12, 2  ;;  %p1453_p9 = por %p1452_p8, %p1451_p7 }
  0x5c   :  { %v234_v47 = vsel %vm226_vm8, %v213_v36, %v216_v37  ;;  %v236_v48 = vsel %vm228_vm9, %v219_v38, %v235_v40  ;;  %v238_v49 = vsel %vm226_vm8, %v216_v37, %v219_v38  ;;  %v240_v50 = vsel %vm228_vm9, %v222_v29, %v239_v43 }
  0x5d   :  { %v318_v51 = vadd.s32 1, %v1245_v41  ;;  %v242_v52 = vshll.u32 %v202_v42, 8  ;;  %v237_v53 = vsel %vm227_vm10, %v234_v47, %v236_v48  ;;  %v1608_v54 = vadd.f32 %v420_v45, %v418_v44  ;;  %p1454_p10 = pnand %p1453_p9, %p1447_p6 }
  0x5e   :  { %v141_v55 = vadd.s32 536870912, %v140_v46  ;;  %v241_v56 = vsel %vm227_vm10, %v238_v49, %v240_v50  ;;  %v210_v59 = vshrl.u32 %v1481_v28, %v209_v1  ;;  %v231_v6 = vsel %vm229_vm7, %v219_v38, 2102212464 }
  0x5f   :  { %vm319_vm11 = vcmp.gt.s32.totalorder %v318_v51, 0  ;;  %v1611_v57 = vmul.u32.u64.low %v242_v52, %v237_v53  ;;  %v1612_v58 = vmul.u32.u64.high %v242_v52, %v237_v53, %v1611_v57  ;;  %v425_v2 = vand.u32 2139095040, %v1608_v54 }
  0x60   :  { %v1616_v61 = vmul.u32.u64.low %v242_v52, %v241_v56  ;;  %v1617_v63 = vmul.u32.u64.high %v242_v52, %v241_v56, %v1616_v61  ;;  %v1620_v5 = vshrl.u32 %v141_v55, 30  ;;  %v320_v7 = vsel %vm319_vm11, %v318_v51, 0 }
  0x61   :  { %v230_v8 = vsel %vm226_vm8, %v210_v59, %v213_v36  ;;  %v232_v9 = vsel %vm228_vm9, %v216_v37, %v231_v6  ;;  %v322_v13 = vand.u32 31, %v320_v7  ;;  %v426_v14 = vshrl.u32 %v425_v2, 23 }
  0x62   :  { %v143_v15 = vshll.u32 %v1620_v5, 30  ;;  %v233_v1 = vsel %vm227_vm10, %v230_v8, %v232_v9  ;;  %v252_v16 = vadd.s32 1, %v1612_v58  ;;  %vm251_vm12 = vc.u32 %v1617_v63, %v1611_v57 }
  0x63   :  { %v323_v17 = vsub.s32 32, %v322_v13  ;;  %v1252_v18 = vadd.s32 4294967169, %v426_v14  ;;  %v249_v22 = vmul.u32 %v242_v52, %v233_v1  ;;  %v308_v27 = vand.u32 2147483647, %v1563_v60 }
  0x64   :  { %v1630_v20 = vsub.s32 %v140_v46, %v143_v15  ;;  %v253_v25 = vsel %vm251_vm12, %v252_v16, %v1612_v58  ;;  %v334_v29 = vshll.u32 %v2685_v19, %v322_v13  ;;  %v1639_v32 = vshrl.u32 %v320_v7, 5 }
  0x65   :  { %v335_v12 = vshrl.u32 %v2680_v21, %v323_v17  ;;  %v432_v24 = vadd.s32 1, %v1252_v18  ;;  %v337_v33 = vshll.u32 %v2680_v21, %v322_v13  ;;  %v338_v35 = vshrl.u32 %v2683_v26, %v323_v17 }
  0x66   :  { %v146_v31 = vsub.s32 0, %v1630_v20  ;;  %v254_v36 = vadd.s32 %v253_v25, %v249_v22  ;;  %v325_v37 = vshll.u32 %v1481_v28, %v322_v13  ;;  %v328_v38 = vshll.u32 %v2690_v30, %v322_v13 }
  0x67   :  { %v326_v39 = vshrl.u32 %v2690_v30, %v323_v17  ;;  %v329_v40 = vshrl.u32 %v2687_v34, %v323_v17  ;;  %v331_v41 = vshll.u32 %v2687_v34, %v322_v13  ;;  %v332_v42 = vshrl.u32 %v2685_v19, %v323_v17 }
  0x68   :  { %v315_v43 = vand.u32 8388607, %v308_v27  ;;  %v336_v44 = vor.u32 %v335_v12, %v334_v29  ;;  %vm433_vm13 = vcmp.gt.s32.totalorder %v432_v24, 0  ;;  %v1232_v45 = vmin.u32 %v146_v31, %v1630_v20 }
  0x69   :  { %v339_v46 = vor.u32 %v338_v35, %v337_v33  ;;  %vm343_vm14 = vcmp.lt.s32.totalorder %v1639_v32, 4  ;;  %v531_v47 = vstv %s1632_s17  ;;  %v255_v48 = vadd.s32 536870912, %v254_v36 }
  0x6a   :  { %v327_v49 = vor.u32 %v326_v39, %v325_v37  ;;  %v330_v50 = vor.u32 %v329_v40, %v328_v38  ;;  %v333_v51 = vor.u32 %v332_v42, %v331_v41  ;;  %vm340_vm15 = vcmp.lt.s32.totalorder %v1639_v32, 1 }
  0x6b   :  { %vm342_vm0 = vcmp.lt.s32.totalorder %v1639_v32, 3  ;;  %v349_v52 = vsel %vm343_vm14, %v336_v44, 920167782  ;;  %v434_v53 = vsel %vm433_vm13, %v432_v24, 0  ;;  %v532_v55 = vmul.f32 %v531_v47, %v1527_v0 }
  0x6c   :  { %v148_v56 = vclz %v1232_v45  ;;  %v316_v58 = vor.u32 8388608, %v315_v43  ;;  %v353_v59 = vsel %vm343_vm14, %v339_v46, 1326507024  ;;  %v1663_v61 = vshrl.u32 %v255_v48, 30 }
  0x6d   :  { %v534_v2 = vstv %s1645_s18  ;;  %vm341_vm1 = vcmp.lt.s32.totalorder %v1639_v32, 2  ;;  %v348_v6 = vsel %vm340_vm15, %v327_v49, %v330_v50  ;;  %v350_v7 = vsel %vm342_vm0, %v333_v51, %v349_v52 }
  0x6e   :  { %v436_v8 = vand.u32 31, %v434_v53  ;;  %v352_v9 = vsel %vm340_vm15, %v330_v50, %v333_v51  ;;  %v354_v13 = vsel %vm342_vm0, %v336_v44, %v353_v59  ;;  %v1675_v14 = vadd.f32 %v534_v2, %v532_v55 }
  0x6f   :  { %v1233_v15 = vadd.s32 4294967294, %v148_v56  ;;  %v1677_v1 = vshll.u32 %v316_v58, 8  ;;  %v257_v16 = vshll.u32 %v1663_v61, 30  ;;  %v351_v18 = vsel %vm341_vm1, %v348_v6, %v350_v7 }
  0x70   :  { %v355_v22 = vsel %vm341_vm1, %v352_v9, %v354_v13  ;;  %v1684_v25 = vsub.s32 32, %v436_v8  ;;  %v539_v29 = vand.u32 2139095040, %v1675_v14  ;;  %v324_v12 = vshrl.u32 %v1481_v28, %v323_v17 }
  0x71   :  { %v2677_v24 = vand.u32 2147483647, %v1608_v54  ;;  %vm1234_vm2 = vcmp.lt.s32.totalorder %v1233_v15, 0  ;;  %v345_v31 = vsel %vm343_vm14, %v333_v51, 2102212464  ;;  %v1696_v37 = vsub.s32 %v254_v36, %v257_v16 }
  0x72   :  { %v1692_v33 = vmul.u32.u64.low %v1677_v1, %v351_v18  ;;  %v1693_v35 = vmul.u32.u64.high %v1677_v1, %v351_v18, %v1692_v33  ;;  %v1699_v38 = vmul.u32.u64.low %v1677_v1, %v355_v22  ;;  %v1700_v39 = vmul.u32.u64.high %v1677_v1, %v355_v22, %v1699_v38 }
  0x73   :  { %v540_v40 = vshrl.u32 %v539_v29, 23  ;;  %v448_v17 = vshll.u32 %v2685_v19, %v436_v8  ;;  %v449_v41 = vshrl.u32 %v2680_v21, %v1684_v25  ;;  %v451_v42 = vshll.u32 %v2680_v21, %v436_v8 }
  0x74   :  { %v452_v43 = vshrl.u32 %v2683_v26, %v1684_v25  ;;  %v344_v44 = vsel %vm340_vm15, %v324_v12, %v327_v49  ;;  %v346_v36 = vsel %vm342_vm0, %v330_v50, %v345_v31  ;;  %v1712_v45 = vshrl.u32 %v434_v53, 5 }
  0x75   :  { %v1259_v46 = vadd.s32 4294967169, %v540_v40  ;;  %v439_v47 = vshll.u32 %v1481_v28, %v436_v8  ;;  %v440_v48 = vshrl.u32 %v2690_v30, %v1684_v25  ;;  %v442_v51 = vshll.u32 %v2690_v30, %v436_v8 }
  0x76   :  { %v443_v52 = vshrl.u32 %v2687_v34, %v1684_v25  ;;  %v445_v55 = vshll.u32 %v2687_v34, %v436_v8  ;;  %v446_v49 = vshrl.u32 %v2685_v19, %v1684_v25  ;;  %v1724_v50 = vsel %vm1234_vm2, 0, %v1233_v15 }
  0x77   :  { %v546_v56 = vadd.s32 1, %v1259_v46  ;;  %v429_v53 = vand.u32 8388607, %v2677_v24  ;;  %v450_v58 = vor.u32 %v449_v41, %v448_v17  ;;  %v453_v59 = vor.u32 %v452_v43, %v451_v42 }
  0x78   :  { %v260_v2 = vsub.s32 0, %v1696_v37  ;;  %v347_v6 = vsel %vm341_vm1, %v344_v44, %v346_v36  ;;  %vm457_vm3 = vcmp.lt.s32.totalorder %v1712_v45, 4  ;;  %v366_v7 = vadd.s32 1, %v1693_v35 }
  0x79   :  { %vm547_vm4 = vcmp.gt.s32.totalorder %v546_v56, 0  ;;  %v1735_v8 = vor.u32 %v440_v48, %v439_v47  ;;  %v1737_v9 = vor.u32 %v443_v52, %v442_v51  ;;  %vm365_vm5 = vc.u32 %v1700_v39, %v1692_v33 }
  0x7a   :  { %v548_v13 = vsel %vm547_vm4, %v546_v56, 0  ;;  %v447_v15 = vor.u32 %v446_v49, %v445_v55  ;;  %vm454_vm6 = vcmp.lt.s32.totalorder %v1712_v45, 1  ;;  %v430_v16 = vor.u32 8388608, %v429_v53 }
  0x7b   :  { %v550_v32 = vand.u32 31, %v548_v13  ;;  %vm456_vm7 = vcmp.lt.s32.totalorder %v1712_v45, 3  ;;  %v463_v18 = vsel %vm457_vm3, %v450_v58, 920167782  ;;  %v467_v22 = vsel %vm457_vm3, %v453_v59, 1326507024 }
  0x7c   :  { %v136_v29 = vadd.s32 %v1566_v62, %v1571_v3  ;;  %v152_v12 = vsub.s32 32, %v1724_v50  ;;  %v156_v31 = vsub.s32 4294967266, %v1724_v50  ;;  %v1239_v38 = vmin.u32 %v260_v2, %v1696_v37 }
  0x7d   :  { %v363_v40 = vmul.u32 %v1677_v1, %v347_v6  ;;  %v367_v17 = vsel %vm365_vm5, %v366_v7, %v1693_v35  ;;  %vm455_vm8 = vcmp.lt.s32.totalorder %v1712_v45, 2  ;;  %v462_v41 = vsel %vm454_vm6, %v1735_v8, %v1737_v9 }
  0x7e   :  { %v464_v62 = vsel %vm456_vm7, %v447_v15, %v463_v18  ;;  %v466_v3 = vsel %vm454_vm6, %v1737_v9, %v447_v15  ;;  %v468_v1 = vsel %vm456_vm7, %v450_v58, %v467_v22  ;;  %v1768_v35 = vsub.s32 32, %v550_v32 }
  0x7f   :  { %v153_v42 = vshll.u32 %v1630_v20, %v1724_v50  ;;  %v1772_v43 = vshll.u32 %v430_v16, 8  ;;  %v154_v44 = vshrl.u32 %v136_v29, %v152_v12  ;;  %v157_v36 = vadd.s32 127, %v156_v31 }
  0x80   :  { %v262_v46 = vclz %v1239_v38  ;;  %v645_v47 = vstv %s1732_s19  ;;  %v1775_v48 = vadd.s32 %v367_v17, %v363_v40  ;;  %v465_v51 = vsel %vm455_vm8, %v462_v41, %v464_v62 }
  0x81   :  { %v469_v52 = vsel %vm455_vm8, %v466_v3, %v468_v1  ;;  %v562_v55 = vshll.u32 %v2685_v19, %v550_v32  ;;  %v2676_v49 = vand.u32 2147483647, %v1675_v14  ;;  %v1783_v20 = vshrl.u32 %v548_v13, 5 }
  0x82   :  { %v563_v56 = vshrl.u32 %v2680_v21, %v1768_v35  ;;  %v565_v50 = vshll.u32 %v2680_v21, %v550_v32  ;;  %v553_v53 = vshll.u32 %v1481_v28, %v550_v32  ;;  %v556_v58 = vshll.u32 %v2690_v30, %v550_v32 }
  0x83   :  { %v559_v59 = vshll.u32 %v2687_v34, %v550_v32  ;;  %v646_v2 = vmul.f32 %v645_v47, %v1527_v0  ;;  %v554_v6 = vshrl.u32 %v2690_v30, %v1768_v35  ;;  %v557_v7 = vshrl.u32 %v2687_v34, %v1768_v35 }
  0x84   :  { %v560_v13 = vshrl.u32 %v2685_v19, %v1768_v35  ;;  %v566_v16 = vshrl.u32 %v2683_v26, %v1768_v35  ;;  %v369_v18 = vadd.s32 536870912, %v1775_v48  ;;  %v438_v22 = vshrl.u32 %v1481_v28, %v1684_v25 }
  0x85   :  { %v564_v32 = vor.u32 %v563_v56, %v562_v55  ;;  %v648_v29 = vstv %s1759_s20  ;;  %v459_v12 = vsel %vm457_vm3, %v447_v15, 2102212464  ;;  %v543_v31 = vand.u32 8388607, %v2676_v49 }
  0x86   :  { %v567_v38 = vor.u32 %v566_v16, %v565_v50  ;;  %vm571_vm9 = vcmp.lt.s32.totalorder %v1783_v20, 4  ;;  %v1810_v40 = vmul.u32.u64.low %v1772_v43, %v469_v52  ;;  %v1811_v17 = vmul.u32.u64.high %v1772_v43, %v469_v52, %v1810_v40 }
  0x87   :  { %v1814_v41 = vmul.u32.u64.low %v1772_v43, %v465_v51  ;;  %v1815_v62 = vmul.u32.u64.high %v1772_v43, %v465_v51, %v1814_v41  ;;  %v555_v25 = vor.u32 %v554_v6, %v553_v53  ;;  %v558_v3 = vor.u32 %v557_v7, %v556_v58 }
  0x88   :  { %v561_v1 = vor.u32 %v560_v13, %v559_v59  ;;  %v1818_v47 = vadd.f32 %v648_v29, %v646_v2  ;;  %v1820_v15 = vshrl.u32 %v369_v18, 30  ;;  %vm568_vm10 = vcmp.lt.s32.totalorder %v1783_v20, 1 }
  0x89   :  { %vm570_vm11 = vcmp.lt.s32.totalorder %v1783_v20, 3  ;;  %v577_v52 = vsel %vm571_vm9, %v564_v32, 920167782  ;;  %v1240_v55 = vadd.s32 4294967294, %v262_v46  ;;  %v544_v56 = vor.u32 8388608, %v543_v31 }
  0x8a   :  { %v581_v51 = vsel %vm571_vm9, %v567_v38, 1326507024  ;;  %v158_v50 = vshll.u32 %v157_v36, 23  ;;  %v458_v53 = vsel %vm454_vm6, %v438_v22, %v1735_v8  ;;  %v460_v58 = vsel %vm456_vm7, %v1737_v9, %v459_v12 }
  0x8b   :  { %vm569_vm12 = vcmp.lt.s32.totalorder %v1783_v20, 2  ;;  %v576_v59 = vsel %vm568_vm10, %v555_v25, %v558_v3  ;;  %v578_v46 = vsel %vm570_vm11, %v561_v1, %v577_v52  ;;  %v653_v2 = vand.u32 2139095040, %v1818_v47 }
  0x8c   :  { %v155_v36 = vor.u32 %v154_v44, %v153_v42  ;;  %v371_v6 = vshll.u32 %v1820_v15, 30  ;;  %v580_v8 = vsel %vm568_vm10, %v558_v3, %v561_v1  ;;  %v582_v9 = vsel %vm570_vm11, %v564_v32, %v581_v51 }
  0x8d   :  { %vm1241_vm13 = vcmp.lt.s32.totalorder %v1240_v55, 0  ;;  %v1849_v7 = vshll.u32 %v544_v56, 8  ;;  %v654_v13 = vshrl.u32 %v653_v2, 23  ;;  %v461_v16 = vsel %vm455_vm8, %v458_v53, %v460_v58 }
  0x8e   :  { %v480_v18 = vadd.s32 1, %v1815_v62  ;;  %v579_v42 = vsel %vm569_vm12, %v576_v59, %v578_v46  ;;  %v159_v44 = vor.u32 4788187, %v158_v50  ;;  %vm479_vm14 = vc.u32 %v1811_v17, %v1814_v41 }
  0x8f   :  { %v583_v22 = vsel %vm569_vm12, %v580_v8, %v582_v9  ;;  %v1266_v32 = vadd.s32 4294967169, %v654_v13  ;;  %v162_v29 = vcvt.s32.f32 %v155_v36  ;;  %v1862_v12 = vsel %vm1241_vm13, 0, %v1240_v55 }
  0x90   :  { %v1865_v45 = vsub.s32 %v1775_v48, %v371_v6  ;;  %v477_v31 = vmul.u32 %v1772_v43, %v461_v16  ;;  %v1869_v38 = vmul.u32.u64.low %v1849_v7, %v579_v42  ;;  %v1870_v40 = vmul.u32.u64.high %v1849_v7, %v579_v42, %v1869_v38 }
  0x91   :  { %v660_v52 = vadd.s32 1, %v1266_v32  ;;  %v481_v56 = vsel %vm479_vm14, %v480_v18, %v1815_v62  ;;  %v552_v51 = vshrl.u32 %v1481_v28, %v1768_v35  ;;  %v160_v53 = vand.u32 2147483647, %v159_v44 }
  0x92   :  { %v1877_v55 = vmul.u32.u64.low %v1849_v7, %v583_v22  ;;  %v1878_v50 = vmul.u32.u64.high %v1849_v7, %v583_v22, %v1877_v55  ;;  %v573_v48 = vsel %vm571_vm9, %v561_v1, 2102212464  ;;  %v759_v43 = vstv %s1840_s21 }
  0x93   :  { %vm661_vm15 = vcmp.gt.s32.totalorder %v660_v52, 0  ;;  %v270_v58 = vsub.s32 4294967266, %v1862_v12  ;;  %v374_v59 = vsub.s32 0, %v1865_v45  ;;  %v1889_v2 = vadd.s32 %v481_v56, %v477_v31 }
  0x94   :  { %v662_v46 = vsel %vm661_vm15, %v660_v52, 0  ;;  %v166_v6 = vsub.s32 4, %v1620_v5  ;;  %v572_v1 = vsel %vm568_vm10, %v552_v51, %v555_v25  ;;  %v574_v8 = vsel %vm570_vm11, %v558_v3, %v573_v48 }
  0x95   :  { %v664_v36 = vand.u32 31, %v662_v46  ;;  %v760_v9 = vmul.f32 %v759_v43, %v1527_v0  ;;  %v163_v13 = vmul.f32 %v162_v29, %v160_v53  ;;  %v250_v16 = vadd.s32 %v1611_v57, %v1617_v63 }
  0x96   :  { %v762_v42 = vstv %s1860_s23  ;;  %vm82_vm0 = vcmp.lt.s32.totalorder %v1530_v4, 0  ;;  %v266_v44 = vsub.s32 32, %v1862_v12  ;;  %v267_v22 = vshll.u32 %v1696_v37, %v1862_v12 }
  0x97   :  { %v1899_v18 = vsub.s32 32, %v664_v36  ;;  %v271_v25 = vadd.s32 127, %v270_v58  ;;  %v1246_v32 = vmin.u32 %v374_v59, %v1865_v45  ;;  %v483_v3 = vadd.s32 536870912, %v1889_v2 }
  0x98   :  { %v575_v29 = vsel %vm569_vm12, %v572_v1, %v574_v8  ;;  %v594_v57 = vadd.s32 1, %v1870_v40  ;;  %v2679_v63 = vand.u32 2147483647, %v1818_v47  ;;  %vm593_vm1 = vc.u32 %v1878_v50, %v1869_v38 }
  0x99   :  { %v1914_v31 = vshrl.u32 %v662_v46, 5  ;;  %v667_v52 = vshll.u32 %v1481_v28, %v664_v36  ;;  %v1917_v37 = vadd.f32 %v762_v42, %v760_v9  ;;  %v670_v12 = vshll.u32 %v2690_v30, %v664_v36 }
  0x9a   :  { %v673_v56 = vshll.u32 %v2687_v34, %v664_v36  ;;  %v676_v20 = vshll.u32 %v2685_v19, %v664_v36  ;;  %v677_v51 = vshrl.u32 %v2680_v21, %v1899_v18  ;;  %v668_v55 = vshrl.u32 %v2690_v30, %v1899_v18 }
  0x9b   :  { %v671_v53 = vshrl.u32 %v2687_v34, %v1899_v18  ;;  %v674_v48 = vshrl.u32 %v2685_v19, %v1899_v18  ;;  %v679_v43 = vshll.u32 %v2680_v21, %v664_v36  ;;  %vm1933_vm2 = vcmp.le.f32.partialorder %v80_v23, 0.7853982 }
  0x9c   :  { %v164_v59 = vxor.u32 2147483648, %v163_v13  ;;  %v591_v46 = vmul.u32 %v1849_v7, %v575_v29  ;;  %v678_v1 = vor.u32 %v677_v51, %v676_v20  ;;  %v680_v8 = vshrl.u32 %v2683_v26, %v1899_v18 }
  0x9d   :  { %v595_v36 = vsel %vm593_vm1, %v594_v57, %v1870_v40  ;;  %v657_v23 = vand.u32 8388607, %v2679_v63  ;;  %vm685_vm3 = vcmp.lt.s32.totalorder %v1914_v31, 4  ;;  %v767_v9 = vand.u32 2139095040, %v1917_v37 }
  0x9e   :  { %v268_v42 = vshrl.u32 %v250_v16, %v266_v44  ;;  %v272_v7 = vshll.u32 %v271_v25, 23  ;;  %v376_v29 = vclz %v1246_v32  ;;  %v1952_v20 = vshrl.u32 %v483_v3, 30 }
  0x9f   :  { %v669_v51 = vor.u32 %v668_v55, %v667_v52  ;;  %v672_v35 = vor.u32 %v671_v53, %v670_v12  ;;  %v675_v62 = vor.u32 %v674_v48, %v673_v56  ;;  %v681_v49 = vor.u32 %v680_v8, %v679_v43 }
  0xa0   :  { %v1954_v24 = vadd.s32 %v595_v36, %v591_v46  ;;  %vm682_vm4 = vcmp.lt.s32.totalorder %v1914_v31, 1  ;;  %vm684_vm5 = vcmp.lt.s32.totalorder %v1914_v31, 3  ;;  %v691_v40 = vsel %vm685_vm3, %v678_v1, 920167782 }
  0xa1   :  { %v167_v16 = vsel %vm82_vm0, %v166_v6, %v1620_v5  ;;  %v658_v44 = vor.u32 8388608, %v657_v23  ;;  %v695_v25 = vsel %vm685_vm3, %v681_v49, 1326507024  ;;  %v768_v32 = vshrl.u32 %v767_v9, 23 }
  0xa2   :  { %v165_v3 = vsel %vm82_vm0, %v164_v59, %v163_v13  ;;  %v269_v57 = vor.u32 %v268_v42, %v267_v22  ;;  %v273_v52 = vor.u32 4788187, %v272_v7  ;;  %v1247_v12 = vadd.s32 4294967294, %v376_v29 }
  0xa3   :  { %v485_v56 = vshll.u32 %v1952_v20, 30  ;;  %vm683_vm6 = vcmp.lt.s32.totalorder %v1914_v31, 2  ;;  %v690_v5 = vsel %vm682_vm4, %v669_v51, %v672_v35  ;;  %v692_v6 = vsel %vm684_vm5, %v675_v62, %v691_v40 }
  0xa4   :  { %v597_v49 = vadd.s32 536870912, %v1954_v24  ;;  %v694_v55 = vsel %vm682_vm4, %v672_v35, %v675_v62  ;;  %v696_v13 = vsel %vm684_vm5, %v678_v1, %v695_v25  ;;  %v1273_v22 = vadd.s32 4294967169, %v768_v32 }
  0xa5   :  { %vm196_vm7 = vcmp.lt.s32.totalorder %v1534_v10, 0  ;;  %v1981_v43 = vshll.u32 %v658_v44, 8  ;;  %v169_v59 = vsel %vm1933_vm2, 0, %v167_v16  ;;  %v280_v46 = vsub.s32 4, %v1663_v61 }
  0xa6   :  { %v693_v8 = vsel %vm683_vm6, %v690_v5, %v692_v6  ;;  %v774_v36 = vadd.s32 1, %v1273_v22  ;;  %v168_v1 = vsel %vm1933_vm2, %v1530_v4, %v165_v3  ;;  %v274_v23 = vand.u32 2147483647, %v273_v52 }
  0xa7   :  { %v276_v9 = vcvt.s32.f32 %v269_v57  ;;  %v697_v42 = vsel %vm683_vm6, %v694_v55, %v696_v13  ;;  %vm1248_vm8 = vcmp.lt.s32.totalorder %v1247_v12, 0  ;;  %v1994_v7 = vsub.s32 %v1889_v2, %v485_v56 }
  0xa8   :  { %v1996_v29 = vshrl.u32 %v597_v49, 30  ;;  %vm775_vm9 = vcmp.gt.s32.totalorder %v774_v36, 0  ;;  %v666_v40 = vshrl.u32 %v1481_v28, %v1899_v18  ;;  %v2007_v25 = vadd.s32 3, %v169_v59 }
  0xa9   :  { %v2001_v16 = vmul.u32.u64.low %v1981_v43, %v693_v8  ;;  %v2002_v44 = vmul.u32.u64.high %v1981_v43, %v693_v8, %v2001_v16  ;;  %v776_v58 = vsel %vm775_vm9, %v774_v36, 0  ;;  %v2678_v3 = vand.u32 2147483647, %v1917_v37 }
  0xaa   :  { %v2010_v32 = vmul.u32.u64.low %v1981_v43, %v697_v42  ;;  %v2011_v2 = vmul.u32.u64.high %v1981_v43, %v697_v42, %v2010_v32  ;;  %1349 = vcosq.f32 %v168_v1  ;;  %v2017_v18 = vsel %vm196_vm7, %v280_v46, %v1663_v61 }
  0xab   :  { %v687_v57 = vsel %vm685_vm3, %v675_v62, 2102212464  ;;  %v778_v52 = vand.u32 31, %v776_v58  ;;  %1351 = vsinq.f32 %v168_v1  ;;  %v2021_v56 = vmul.f32 %v276_v9, %v274_v23 }
  0xac   :  { %v2025_v5 = vadd.s32 %v1692_v33, %v1700_v39  ;;  %v2028_v6 = vsel %vm1248_vm8, 0, %v1247_v12  ;;  %v488_v49 = vsub.s32 0, %v1994_v7  ;;  %v599_v55 = vshll.u32 %v1996_v29, 30 }
  0xad   :  { %v686_v61 = vsel %vm682_vm4, %v666_v40, %v669_v51  ;;  %v779_v13 = vsub.s32 32, %v778_v52  ;;  %v688_v62 = vsel %vm684_vm5, %v672_v35, %v687_v57  ;;  %v771_v22 = vand.u32 8388607, %v2678_v3 }
  0xae   :  { %v777_v33 = vshrl.u32 %v776_v58, 5  ;;  %v781_v39 = vshll.u32 %v1481_v28, %v778_v52  ;;  %v784_v59 = vshll.u32 %v2690_v30, %v778_v52  ;;  %v790_v51 = vshll.u32 %v2685_v19, %v778_v52 }
  0xaf   :  { %v782_v12 = vshrl.u32 %v2690_v30, %v779_v13  ;;  %v785_v46 = vshrl.u32 %v2687_v34, %v779_v13  ;;  %v787_v8 = vshll.u32 %v2687_v34, %v778_v52  ;;  %v788_v35 = vshrl.u32 %v2685_v19, %v779_v13 }
  0xb0   :  { %v791_v36 = vshrl.u32 %v2680_v21, %v779_v13  ;;  %v793_v1 = vshll.u32 %v2680_v21, %v778_v52  ;;  %v384_v23 = vsub.s32 4294967266, %v2028_v6  ;;  %v1253_v9 = vmin.u32 %v488_v49, %v1994_v7 }
  0xb1   :  { %v708_v42 = vadd.s32 1, %v2002_v44  ;;  %v873_v40 = vstv %s2005_s0  ;;  %v689_v58 = vsel %vm683_vm6, %v686_v61, %v688_v62  ;;  %vm707_vm10 = vc.u32 %v2011_v2, %v2001_v16 }
  0xb2   :  { %v772_v32 = vor.u32 8388608, %v771_v22  ;;  %v794_v57 = vshrl.u32 %v2683_v26, %v779_v13  ;;  %v780_v48 = vshrl.u32 %v1481_v28, %v779_v13  ;;  %v783_v3 = vor.u32 %v782_v12, %v781_v39 }
  0xb3   :  { %v786_v52 = vor.u32 %v785_v46, %v784_v59  ;;  %v792_v53 = vor.u32 %v791_v36, %v790_v51  ;;  %v2060_v49 = vsub.s32 %v1954_v24, %v599_v55  ;;  %v789_v63 = vor.u32 %v788_v35, %v787_v8 }
  0xb4   :  { %v795_v21 = vor.u32 %v794_v57, %v793_v1  ;;  %vm796_vm11 = vcmp.lt.s32.totalorder %v777_v33, 1  ;;  %vm2064_vm12 = vcmp.le.f32.partialorder %v194_v11, 0.7853982  ;;  %v705_v61 = vmul.u32 %v1981_v43, %v689_v58 }
  0xb5   :  { %v709_v13 = vsel %vm707_vm10, %v708_v42, %v2002_v44  ;;  %vm798_vm13 = vcmp.lt.s32.totalorder %v777_v33, 3  ;;  %v874_v62 = vmul.f32 %v873_v40, %v1527_v0  ;;  %vm797_vm14 = vcmp.lt.s32.totalorder %v777_v33, 2 }
  0xb6   :  { %vm799_vm15 = vcmp.lt.s32.totalorder %v777_v33, 4  ;;  %v812_v24 = vshll.u32 %v772_v32, 8  ;;  %v876_v55 = vstv %s2039_s27  ;;  %vm310_vm0 = vcmp.lt.s32.totalorder %v1563_v60, 0 }
  0xb7   :  { %v800_v11 = vsel %vm796_vm11, %v780_v48, %v783_v3  ;;  %v801_v22 = vsel %vm799_vm15, %v789_v63, 2102212464  ;;  %v804_v39 = vsel %vm796_vm11, %v783_v3, %v786_v52  ;;  %v805_v12 = vsel %vm799_vm15, %v792_v53, 920167782  ;;  %v2077_v59 = vpop.eup %1349 }
  0xb8   :  { %v802_v43 = vsel %vm798_vm13, %v786_v52, %v801_v22  ;;  %v806_v44 = vsel %vm798_vm13, %v789_v63, %v805_v12  ;;  %v808_v0 = vsel %vm796_vm11, %v786_v52, %v789_v63  ;;  %v809_v46 = vsel %vm799_vm15, %v795_v21, 1326507024  ;;  %v2082_v51 = vpop.eup %1351 }
  0xb9   :  { %v278_v8 = vxor.u32 2147483648, %v2021_v56  ;;  %v380_v35 = vsub.s32 32, %v2028_v6  ;;  %v490_v48 = vclz %v1253_v9  ;;  %v2086_v36 = vadd.f32 %v876_v55, %v874_v62 }
  0xba   :  { %vm2090_vm1 = vcmp.le.f32.partialorder %v308_v27, 0.7853982  ;;  %v385_v1 = vadd.s32 127, %v384_v23  ;;  %v2094_v42 = vadd.s32 %v709_v13, %v705_v61  ;;  %v807_v21 = vsel %vm797_vm14, %v804_v39, %v806_v44 }
  0xbb   :  { %v810_v63 = vsel %vm798_vm13, %v792_v53, %v809_v46  ;;  %v803_v40 = vsel %vm797_vm14, %v800_v11, %v802_v43  ;;  %v2100_v9 = vmul.u32.u64.low %v812_v24, %v807_v21  ;;  %v2101_v32 = vmul.u32.u64.high %v812_v24, %v807_v21, %v2100_v9 }
  0xbc   :  { %v811_v58 = vsel %vm797_vm14, %v808_v0, %v810_v63  ;;  %v394_v27 = vsub.s32 4, %v1820_v15  ;;  %v602_v57 = vsub.s32 0, %v2060_v49  ;;  %v2110_v61 = vand.u32 3, %v2007_v25 }
  0xbd   :  { %v2106_v52 = vmul.u32.u64.low %v812_v24, %v811_v58  ;;  %v2107_v23 = vmul.u32.u64.high %v812_v24, %v811_v58, %v2106_v52  ;;  %v1254_v13 = vadd.s32 4294967294, %v490_v48  ;;  %v881_v62 = vand.u32 2139095040, %v2086_v36 }
  0xbe   :  { %v283_v33 = vsel %vm2064_vm12, 0, %v2017_v18  ;;  %v381_v55 = vshll.u32 %v1865_v45, %v2028_v6  ;;  %v382_v11 = vshrl.u32 %v2025_v5, %v380_v35  ;;  %v819_v22 = vmul.u32 %v812_v24, %v803_v40 }
  0xbf   :  { %v279_v25 = vsel %vm196_vm7, %v278_v8, %v2021_v56  ;;  %v386_v39 = vshll.u32 %v385_v1, 23  ;;  %v711_v12 = vadd.s32 536870912, %v2094_v42  ;;  %v822_v43 = vadd.s32 1, %v2101_v32 }
  0xc0   :  { %v395_v44 = vsel %vm310_vm0, %v394_v27, %v1820_v15  ;;  %v1260_v18 = vmin.u32 %v602_v57, %v2060_v49  ;;  %vm821_vm2 = vc.u32 %v2107_v23, %v2100_v9  ;;  %v882_v45 = vshrl.u32 %v881_v62, 23 }
  0xc1   :  { %vm176_vm3 = vcmp.eq.s32.totalorder %v2110_v61, 0  ;;  %vm179_vm4 = vcmp.eq.s32.totalorder %v2110_v61, 2  ;;  %vm1255_vm5 = vcmp.lt.s32.totalorder %v1254_v13, 0  ;;  %v823_v56 = vsel %vm821_vm2, %v822_v43, %v2101_v32 }
  0xc2   :  { %v282_v15 = vsel %vm2064_vm12, %v1534_v10, %v279_v25  ;;  %v383_v5 = vor.u32 %v382_v11, %v381_v55  ;;  %v824_v6 = vadd.s32 %v823_v56, %v819_v22  ;;  %v1280_v24 = vadd.s32 4294967169, %v882_v45  ;;  %v2156_v25 = vld [vmem:[#allocation10] sm:$0xff] }
  0xc3   :  { %v2141_v0 = vadd.s32 3, %v283_v33  ;;  %v387_v46 = vor.u32 4788187, %v386_v39  ;;  %v397_v8 = vsel %vm2090_vm1, 0, %v395_v44  ;;  %v2145_v35 = vshrl.u32 %v711_v12, 30 }
  0xc4   :  { %v493_v48 = vsel %vm1255_vm5, 0, %v1254_v13  ;;  %v604_v1 = vclz %v1260_v18  ;;  %v825_v21 = vadd.s32 536870912, %v824_v6  ;;  %v888_v63 = vadd.s32 1, %v1280_v24 }
  0xc5   :  { %v177_v40 = vxor.u32 2147483648, %v2082_v51  ;;  %v180_v31 = vxor.u32 2147483648, %v2077_v59  ;;  %1353 = vcosq.f32 %v282_v15  ;;  %v987_v58 = vstv %s2114_s29 }
  0xc6   :  { %v390_v32 = vcvt.s32.f32 %v383_v5  ;;  %v478_v27 = vadd.s32 %v1814_v41, %v1811_v17  ;;  %v494_v57 = vsub.s32 32, %v493_v48  ;;  %vm889_vm6 = vcmp.gt.s32.totalorder %v888_v63, 0 }
  0xc7   :  { %v388_v52 = vand.u32 2147483647, %v387_v46  ;;  %v498_v62 = vsub.s32 4294967266, %v493_v48  ;;  %v713_v13 = vshll.u32 %v2145_v35, 30  ;;  %v890_v33 = vsel %vm889_vm6, %v888_v63, 0 }
  0xc8   :  { %v1261_v55 = vadd.s32 4294967294, %v604_v1  ;;  %v2153_v11 = vshrl.u32 %v825_v21, 30  ;;  %v2682_v22 = vand.u32 2147483647, %v2086_v36  ;;  %v988_v39 = vmul.f32 %v2156_v25, %v987_v58 }
  0xc9   :  { %1355 = vsinq.f32 %v282_v15  ;;  %v2159_v12 = vadd.s32 3, %v397_v8  ;;  %v892_v17 = vand.u32 31, %v890_v33  ;;  %v990_v41 = vstv %s2136_s30 }
  0xca   :  { %v2165_v43 = vsel %vm176_vm3, %v2077_v59, %v177_v40  ;;  %v2170_v44 = vsel %vm179_vm4, %v180_v31, %v2082_v51  ;;  %v495_v18 = vshll.u32 %v1994_v7, %v493_v48  ;;  %v496_v45 = vshrl.u32 %v478_v27, %v494_v57 }
  0xcb   :  { %v2173_v56 = vmul.f32 %v390_v32, %v388_v52  ;;  %v499_v15 = vadd.s32 127, %v498_v62  ;;  %v2176_v5 = vsub.s32 %v2094_v42, %v713_v13  ;;  %v893_v24 = vsub.s32 32, %v892_v17 }
  0xcc   :  { %vm1262_vm7 = vcmp.lt.s32.totalorder %v1261_v55, 0  ;;  %v827_v46 = vshll.u32 %v2153_v11, 30  ;;  %v885_v59 = vand.u32 8388607, %v2682_v22  ;;  %v2181_v8 = vadd.f32 %v990_v41, %v988_v39 }
  0xcd   :  { %v895_v51 = vshll.u32 %v1481_v28, %v892_v17  ;;  %v896_v7 = vshrl.u32 %v2690_v30, %v893_v24  ;;  %v898_v48 = vshll.u32 %v2690_v30, %v892_v17  ;;  %v899_v1 = vshrl.u32 %v2687_v34, %v893_v24 }
  0xce   :  { %v2187_v21 = vor.u32 %v496_v45, %v495_v18  ;;  %v891_v42 = vshrl.u32 %v890_v33, 5  ;;  %v901_v63 = vshll.u32 %v2687_v34, %v892_v17  ;;  %v902_v40 = vshrl.u32 %v2685_v19, %v893_v24 }
  0xcf   :  { %v500_v31 = vshll.u32 %v499_v15, 23  ;;  %v592_v58 = vadd.s32 %v1869_v38, %v1878_v50  ;;  %v716_v32 = vsub.s32 0, %v2176_v5  ;;  %v904_v27 = vshll.u32 %v2685_v19, %v892_v17 }
  0xd0   :  { %v2196_v57 = vsel %vm1262_vm7, 0, %v1261_v55  ;;  %v2198_v52 = vsub.s32 %v824_v6, %v827_v46  ;;  %v886_v62 = vor.u32 8388608, %v885_v59  ;;  %v995_v13 = vand.u32 2139095040, %v2181_v8 }
  0xd1   :  { %vm175_vm8 = vcmp.lt.s32.totalorder %v2110_v61, 2  ;;  %v897_v33 = vor.u32 %v896_v7, %v895_v51  ;;  %v900_v39 = vor.u32 %v899_v1, %v898_v48  ;;  %v2700_v41 = vmov 920167782  }
  0xd2   :  { %v905_v18 = vshrl.u32 %v2700_v41, %v893_v24  ;;  %v907_v38 = vshll.u32 %v2700_v41, %v892_v17  ;;  %v2204_v50 = vpop.eup %1353  ;;  %v894_v45 = vshrl.u32 %v1481_v28, %v893_v24  ;;  %v903_v15 = vor.u32 %v902_v40, %v901_v63 }
  0xd3   :  { %v908_v55 = vshrl.u32 %v2683_v26, %v893_v24  ;;  %vm910_vm9 = vcmp.lt.s32.totalorder %v891_v42, 1  ;;  %v612_v6 = vsub.s32 4294967266, %v2196_v57  ;;  %v1267_v46 = vmin.u32 %v716_v32, %v2176_v5 }
  0xd4   :  { %v906_v59 = vor.u32 %v905_v18, %v904_v27  ;;  %vm913_vm10 = vcmp.lt.s32.totalorder %v891_v42, 4  ;;  %vm912_vm11 = vcmp.lt.s32.totalorder %v891_v42, 3  ;;  %v926_v48 = vshll.u32 %v886_v62, 8 }
  0xd5   :  { %v909_v51 = vor.u32 %v908_v55, %v907_v38  ;;  %v915_v7 = vsel %vm913_vm10, %v903_v15, 2102212464  ;;  %vm172_vm12 = vweird.f32 %v1530_v4  ;;  %vm911_vm13 = vcmp.lt.s32.totalorder %v891_v42, 2 }
  0xd6   :  { %v918_v17 = vsel %vm910_vm9, %v897_v33, %v900_v39  ;;  %v919_v1 = vsel %vm913_vm10, %v906_v59, 920167782  ;;  %v996_v24 = vshrl.u32 %v995_v13, 23  ;;  %v2214_v63 = vpop.eup %1355  ;;  %v830_v40 = vsub.s32 0, %v2198_v52 }
  0xd7   :  { %v914_v32 = vsel %vm910_vm9, %v894_v45, %v897_v33  ;;  %v916_v27 = vsel %vm912_vm11, %v900_v39, %v915_v7  ;;  %v922_v18 = vsel %vm910_vm9, %v900_v39, %v903_v15  ;;  %v608_v62 = vsub.s32 32, %v2196_v57 }
  0xd8   :  { %v920_v38 = vsel %vm912_vm11, %v903_v15, %v919_v1  ;;  %v923_v55 = vsel %vm913_vm10, %v909_v51, 1326507024  ;;  %v1287_v53 = vadd.s32 4294967169, %v996_v24  ;;  %v501_v22 = vor.u32 4788187, %v500_v31 }
  0xd9   :  { %v718_v26 = vclz %v1267_v46  ;;  %v921_v13 = vsel %vm911_vm13, %v918_v17, %v920_v38  ;;  %v924_v19 = vsel %vm912_vm11, %v906_v59, %v923_v55  ;;  %v917_v34 = vsel %vm911_vm13, %v914_v32, %v916_v27 }
  0xda   :  { %v925_v33 = vsel %vm911_vm13, %v922_v18, %v924_v19  ;;  %v2227_v45 = vmul.u32.u64.low %v926_v48, %v921_v13  ;;  %v2228_v7 = vmul.u32.u64.high %v926_v48, %v921_v13, %v2227_v45  ;;  %v613_v39 = vadd.s32 127, %v612_v6 }
  0xdb   :  { %v1274_v15 = vmin.u32 %v830_v40, %v2198_v52  ;;  %v2232_v1 = vmul.u32.u64.low %v926_v48, %v925_v33  ;;  %v2233_v51 = vmul.u32.u64.high %v926_v48, %v925_v33, %v2232_v1  ;;  %v2236_v31 = vand.u32 3, %v2141_v0 }
  0xdc   :  { %v609_v46 = vshll.u32 %v2060_v49, %v2196_v57  ;;  %v610_v59 = vshrl.u32 %v592_v58, %v608_v62  ;;  %v1002_v17 = vadd.s32 1, %v1287_v53  ;;  %v182_v19 = vsel %vm175_vm8, %v2165_v43, %v2170_v44 }
  0xdd   :  { %v392_v42 = vxor.u32 2147483648, %v2173_v56  ;;  %v1268_v6 = vadd.s32 4294967294, %v718_v26  ;;  %v933_v24 = vmul.u32 %v926_v48, %v917_v34  ;;  %v502_v40 = vand.u32 2147483647, %v501_v22 }
  0xde   :  { %v504_v0 = vcvt.s32.f32 %v2187_v21  ;;  %v936_v32 = vadd.s32 1, %v2228_v7  ;;  %vm1003_vm14 = vcmp.gt.s32.totalorder %v1002_v17, 0  ;;  %v2250_v49 = vand.u32 3, %v2159_v12 }
  0xdf   :  { %v614_v53 = vshll.u32 %v613_v39, 23  ;;  %v832_v58 = vclz %v1274_v15  ;;  %vm935_vm15 = vc.u32 %v2233_v51, %v2227_v45  ;;  %v2254_v61 = vor.u32 %v610_v59, %v609_v46 }
  0xe0   :  { %v937_v26 = vsel %vm935_vm15, %v936_v32, %v2228_v7  ;;  %v2689_v34 = vand.u32 2147483647, %v2181_v8  ;;  %v1004_v22 = vsel %vm1003_vm14, %v1002_v17, 0  ;;  %v2260_v43 = vsel %vm172_vm12, nan, %v182_v19 }
  0xe1   :  { %vm1269_vm2 = vcmp.lt.s32.totalorder %v1268_v6, 0  ;;  %v938_v12 = vadd.s32 %v937_v26, %v933_v24  ;;  %v2267_v57 = vsel %vm310_vm0, %v392_v42, %v2173_v56  ;;  %v2269_v48 = vmul.f32 %v504_v0, %v502_v40 }
  0xe2   :  { %v1006_v27 = vand.u32 31, %v1004_v22  ;;  %v2271_v18 = vor.u32 4788187, %v614_v53  ;;  %v2275_v4 = vadd.s32 %v2001_v16, %v2011_v2  ;;  %v1275_v62 = vadd.s32 4294967294, %v832_v58 }
  0xe3   :  { %v939_v38 = vadd.s32 536870912, %v938_v12  ;;  %v2280_v13 = vsel %vm1269_vm2, 0, %v1268_v6  ;;  %v999_v56 = vand.u32 8388607, %v2689_v34  ;;  %v1101_v16 = vstv %s2245_s6 }
  0xe4   :  { %v1007_v33 = vsub.s32 32, %v1006_v27  ;;  %v1009_v39 = vshll.u32 %v1481_v28, %v1006_v27  ;;  %v1012_v15 = vshll.u32 %v2690_v30, %v1006_v27  ;;  %v1005_v2 = vshrl.u32 %v1004_v22, 5 }
  0xe5   :  { %v2284_v7 = vshrl.u32 %v939_v38, 30  ;;  %v2702_v46 = vmov 2131351028   ;;  %v2703_v17 = vmov 2102212464   ;;  %v726_v42 = vsub.s32 4294967266, %v2280_v13 }
  0xe6   :  { %v1010_v1 = vshrl.u32 %v2690_v30, %v1007_v33  ;;  %v1015_v59 = vshll.u32 %v2702_v46, %v1006_v27  ;;  %v1018_v19 = vshll.u32 %v2703_v17, %v1006_v27  ;;  %vm1276_vm0 = vcmp.lt.s32.totalorder %v1275_v62, 0 }
  0xe7   :  { %2701 = vst [vmem:[#allocation16_spill] sm:$0xff] %v2284_v7  ;;  %v941_v6 = vshll.u32 %v2284_v7, 30  ;;  %v1013_v24 = vshrl.u32 %v2702_v46, %v1007_v33  ;;  %v1000_v40 = vor.u32 8388608, %v999_v56  ;;  %v1016_v0 = vshrl.u32 %v2703_v17, %v1007_v33 }
  0xe8   :  { %v1019_v32 = vshrl.u32 %v2700_v41, %v1007_v33  ;;  %v1102_v53 = vmul.f32 %v2156_v25, %v1101_v16  ;;  %v1011_v26 = vor.u32 %v1010_v1, %v1009_v39  ;;  %v1021_v38 = vshll.u32 %v2700_v41, %v1006_v27 }
  0xe9   :  { %v2298_v58 = vsub.s32 %v938_v12, %v941_v6  ;;  %v1014_v22 = vor.u32 %v1013_v24, %v1012_v15  ;;  %vm293_vm3 = vcmp.eq.s32.totalorder %v2236_v31, 2  ;;  %v1017_v34 = vor.u32 %v1016_v0, %v1015_v59 }
  0xea   :  { %v1020_v30 = vor.u32 %v1019_v32, %v1018_v19  ;;  %v2704_v21 = vmov 1326507024   ;;  %vm1024_vm4 = vcmp.lt.s32.totalorder %v1005_v2, 1  ;;  %v1008_v44 = vshrl.u32 %v1481_v28, %v1007_v33 }
  0xeb   :  { %v1022_v55 = vshrl.u32 %v2704_v21, %v1007_v33  ;;  %v944_v56 = vsub.s32 0, %v2298_v58  ;;  %vm1026_vm5 = vcmp.lt.s32.totalorder %v1005_v2, 3  ;;  %v1104_v7 = vstv %s2277_s7 }
  0xec   :  { %vm424_vm6 = vcmp.lt.s32.totalorder %v1608_v54, 0  ;;  %vm1025_vm7 = vcmp.lt.s32.totalorder %v1005_v2, 2  ;;  %vm1027_vm8 = vcmp.lt.s32.totalorder %v1005_v2, 4  ;;  %v1040_v12 = vshll.u32 %v1000_v40, 8 }
  0xed   :  { %v1023_v25 = vor.u32 %v1022_v55, %v1021_v38  ;;  %v1281_v27 = vmin.u32 %v944_v56, %v2298_v58  ;;  %v1029_v39 = vsel %vm1027_vm8, %v1017_v34, 2102212464  ;;  %v1032_v15 = vsel %vm1024_vm4, %v1011_v26, %v1014_v22 }
  0xee   :  { %v1033_v16 = vsel %vm1027_vm8, %v1020_v30, 920167782  ;;  %v1036_v59 = vsel %vm1024_vm4, %v1014_v22, %v1017_v34  ;;  %v2311_v33 = vadd.f32 %v1104_v7, %v1102_v53  ;;  %v2705_v6 = vand.u32 2147483647, %v1608_v54 }
  0xef   :  { %v1034_v1 = vsel %vm1026_vm5, %v1017_v34, %v1033_v16  ;;  %v1037_v19 = vsel %vm1027_vm8, %v1023_v25, 1326507024  ;;  %v722_v24 = vsub.s32 32, %v2280_v13  ;;  %v727_v40 = vadd.s32 127, %v726_v42 }
  0xf0   :  { %vm2315_vm9 = vcmp.le.f32.partialorder %v2705_v6, 0.7853982  ;;  %v1028_v0 = vsel %vm1024_vm4, %v1008_v44, %v1011_v26  ;;  %v1030_v32 = vsel %vm1026_vm5, %v1014_v22, %v1029_v39  ;;  %v616_v38 = vand.u32 2147483647, %v2271_v18 }
  0xf1   :  { %v835_v34 = vsel %vm1276_vm0, 0, %v1275_v62  ;;  %v1035_v7 = vsel %vm1025_vm7, %v1032_v15, %v1034_v1  ;;  %v1038_v53 = vsel %vm1026_vm5, %v1020_v30, %v1037_v19  ;;  %v946_v56 = vclz %v1281_v27 }
  0xf2   :  { %v1039_v25 = vsel %vm1025_vm7, %v1036_v59, %v1038_v53  ;;  %v2327_v16 = vmul.u32.u64.low %v1040_v12, %v1035_v7  ;;  %v2328_v6 = vmul.u32.u64.high %v1040_v12, %v1035_v7, %v2327_v16  ;;  %vm290_vm10 = vcmp.eq.s32.totalorder %v2236_v31, 0 }
  0xf3   :  { %v1031_v44 = vsel %vm1025_vm7, %v1028_v0, %v1030_v32  ;;  %v2333_v42 = vmul.u32.u64.low %v1040_v12, %v1039_v25  ;;  %v2334_v26 = vmul.u32.u64.high %v1040_v12, %v1039_v25, %v2333_v42  ;;  %v1109_v18 = vand.u32 2139095040, %v2311_v33 }
  0xf4   :  { %v506_v62 = vxor.u32 2147483648, %v2269_v48  ;;  %vm538_vm11 = vcmp.lt.s32.totalorder %v1675_v14, 0  ;;  %v723_v30 = vshll.u32 %v2176_v5, %v2280_v13  ;;  %v724_v22 = vshrl.u32 %v2275_v4, %v722_v24 }
  0xf5   :  { %v728_v27 = vshll.u32 %v727_v40, 23  ;;  %v820_v39 = vadd.s32 %v2100_v9, %v2107_v23  ;;  %v836_v2 = vsub.s32 32, %v835_v34  ;;  %v840_v15 = vsub.s32 4294967266, %v835_v34 }
  0xf6   :  { %v1110_v1 = vshrl.u32 %v1109_v18, 23  ;;  %v2708_v59 = vxor.u32 2147483648, %v2204_v50  ;;  %v508_v0 = vsub.s32 4, %v1952_v20  ;;  %v1282_v32 = vadd.s32 4294967294, %v946_v56 }
  0xf7   :  { %v1047_v5 = vmul.u32 %v1040_v12, %v1031_v44  ;;  %v396_v4 = vsel %vm2090_vm1, %v1563_v60, %v2267_v57  ;;  %v2709_v9 = vcvt.s32.f32 %v2254_v61  ;;  %vm1049_vm12 = vc.u32 %v2334_v26, %v2327_v16 }
  0xf8   :  { %v2349_v19 = vsel %vm293_vm3, %v2708_v59, %v2214_v63  ;;  %v1050_v13 = vadd.s32 1, %v2328_v6  ;;  %v507_v24 = vsel %vm424_vm6, %v506_v62, %v2269_v48  ;;  %v725_v40 = vor.u32 %v724_v22, %v723_v30 }
  0xf9   :  { %v619_v23 = vmul.f32 %v2709_v9, %v616_v38  ;;  %v729_v7 = vor.u32 4788187, %v728_v27  ;;  %v1294_v12 = vadd.s32 4294967169, %v1110_v1  ;;  %v837_v53 = vshll.u32 %v2198_v52, %v835_v34 }
  0xfa   :  { %v838_v56 = vshrl.u32 %v820_v39, %v836_v2  ;;  %v841_v3 = vadd.s32 127, %v840_v15  ;;  %v1051_v57 = vsel %vm1049_vm12, %v1050_v13, %v2328_v6  ;;  %1357 = vcosq.f32 %v396_v4 }
  0xfb   :  { %v2369_v61 = vsel %vm424_vm6, %v508_v0, %v1952_v20  ;;  %vm1283_vm1 = vcmp.lt.s32.totalorder %v1282_v32, 0  ;;  %v1052_v38 = vadd.s32 %v1051_v57, %v1047_v5  ;;  %1359 = vsinq.f32 %v396_v4 }
  0xfc   :  { %v510_v48 = vsel %vm2315_vm9, %v1608_v54, %v507_v24  ;;  %v620_v25 = vxor.u32 2147483648, %v619_v23  ;;  %v1116_v44 = vadd.s32 1, %v1294_v12  ;;  %v730_v52 = vand.u32 2147483647, %v729_v7 }
  0xfd   :  { %v732_v34 = vcvt.s32.f32 %v725_v40  ;;  %v1053_v42 = vadd.s32 536870912, %v1052_v38  ;;  %v1106_v6 = vand.u32 2147483647, %v2311_v33  ;;  %v2375_v18 = vor.u32 %v838_v56, %v837_v53 }
  0xfe   :  { %v842_v62 = vshll.u32 %v841_v3, 23  ;;  %v2377_v30 = vsel %vm1283_vm1, 0, %v1282_v32  ;;  %vm1117_vm13 = vcmp.gt.s32.totalorder %v1116_v44, 0  ;;  %v2710_v20 = vxor.u32 2147483648, %v2214_v63 }
  0xff   :  { %1361 = vcosq.f32 %v510_v48  ;;  %v2386_v27 = vshrl.u32 %v1053_v42, 30  ;;  %v1118_v39 = vsel %vm1117_vm13, %v1116_v44, 0  ;;  %v511_v2 = vsel %vm2315_vm9, 0, %v2369_v61 }
 0x100   :  { %v2384_v22 = vsel %vm290_vm10, %v2204_v50, %v2710_v20  ;;  %1363 = vsinq.f32 %v510_v48  ;;  %v2393_v15 = vsel %vm538_vm11, %v620_v25, %v619_v23  ;;  %v1120_v1 = vand.u32 31, %v1118_v39 }
 0x101   :  { %v2395_v63 = vmul.f32 %v732_v34, %v730_v52  ;;  %v954_v59 = vsub.s32 4294967266, %v2377_v30  ;;  %v1055_v50 = vshll.u32 %v2386_v27, 30  ;;  %v1113_v0 = vand.u32 8388607, %v1106_v6 }
 0x102   :  { %v2401_v32 = vor.u32 4788187, %v842_v62  ;;  %v846_v5 = vcvt.s32.f32 %v2375_v18  ;;  %v934_v4 = vadd.s32 %v2227_v45, %v2233_v51  ;;  %v1121_v9 = vsub.s32 32, %v1120_v1 }
 0x103   :  { %v950_v23 = vsub.s32 32, %v2377_v30  ;;  %v2407_v13 = vsub.s32 %v1052_v38, %v1055_v50  ;;  %v1123_v24 = vshll.u32 %v1481_v28, %v1120_v1  ;;  %v2711_v40 = vmov 2475754826  }
 0x104   :  { %v1126_v7 = vshll.u32 %v2711_v40, %v1120_v1  ;;  %v1124_v12 = vshrl.u32 %v2711_v40, %v1121_v9  ;;  %v1127_v53 = vshrl.u32 %v2702_v46, %v1121_v9  ;;  %v1129_v56 = vshll.u32 %v2702_v46, %v1120_v1 }
 0x105   :  { %v1132_v3 = vshll.u32 %v2703_v17, %v1120_v1  ;;  %v955_v57 = vadd.s32 127, %v954_v59  ;;  %v1058_v45 = vsub.s32 0, %v2407_v13  ;;  %v1114_v51 = vor.u32 8388608, %v1113_v0 }
 0x106   :  { %v1130_v48 = vshrl.u32 %v2703_v17, %v1121_v9  ;;  %v951_v38 = vshll.u32 %v2298_v58, %v2377_v30  ;;  %v1048_v25 = vadd.s32 %v2327_v16, %v2334_v26  ;;  %v1119_v44 = vshrl.u32 %v1118_v39, 5 }
 0x107   :  { %v1133_v52 = vshrl.u32 %v2700_v41, %v1121_v9  ;;  %vm289_vm14 = vcmp.lt.s32.totalorder %v2236_v31, 2  ;;  %v1288_v46 = vmin.u32 %v1058_v45, %v2407_v13  ;;  %v1122_v34 = vshrl.u32 %v1481_v28, %v1121_v9  ;;  %v2425_v20 = vpop.eup %1357 }
 0x108   :  { %v1125_v42 = vor.u32 %v1124_v12, %v1123_v24  ;;  %v1128_v62 = vor.u32 %v1127_v53, %v1126_v7  ;;  %v2712_v17 = vand.u32 2147483647, %v1675_v14  ;;  %v1131_v16 = vor.u32 %v1130_v48, %v1129_v56  ;;  %v2435_v59 = vpop.eup %1359 }
 0x109   :  { %v1134_v26 = vor.u32 %v1133_v52, %v1132_v3  ;;  %v1135_v30 = vshll.u32 %v2700_v41, %v1120_v1  ;;  %v1136_v39 = vshrl.u32 %v2704_v21, %v1121_v9  ;;  %v952_v50 = vshrl.u32 %v934_v4, %v950_v23 }
 0x10a   :  { %vm2429_vm15 = vcmp.le.f32.partialorder %v2712_v17, 0.7853982  ;;  %v956_v28 = vshll.u32 %v955_v57, 23  ;;  %v1060_v0 = vclz %v1288_v46  ;;  %v2437_v24 = vshll.u32 %v1114_v51, 8 }
 0x10b   :  { %v1137_v40 = vor.u32 %v1136_v39, %v1135_v30  ;;  %vm1138_vm2 = vcmp.lt.s32.totalorder %v1119_v44, 1  ;;  %vm1139_vm0 = vcmp.lt.s32.totalorder %v1119_v44, 2  ;;  %vm1140_vm3 = vcmp.lt.s32.totalorder %v1119_v44, 3 }
 0x10c   :  { %vm286_vm4 = vweird.f32 %v1534_v10  ;;  %v1289_v7 = vadd.s32 4294967294, %v1060_v0  ;;  %vm1141_vm5 = vcmp.lt.s32.totalorder %v1119_v44, 4  ;;  %v1142_v12 = vsel %vm1138_vm2, %v1122_v34, %v1125_v42  ;;  %v2440_v41 = vpop.eup %1361 }
 0x10d   :  { %v1146_v53 = vsel %vm1138_vm2, %v1125_v42, %v1128_v62  ;;  %v1143_v21 = vsel %vm1141_vm5, %v1131_v16, 2102212464  ;;  %v1147_v1 = vsel %vm1141_vm5, %v1134_v26, 920167782  ;;  %v1150_v9 = vsel %vm1138_vm2, %v1128_v62, %v1131_v16  ;;  %v2442_v23 = vpop.eup %1363 }
 0x10e   :  { %v1151_v4 = vsel %vm1141_vm5, %v1137_v40, 1326507024  ;;  %vm1290_vm6 = vcmp.lt.s32.totalorder %v1289_v7, 0  ;;  %v1144_v56 = vsel %vm1140_vm3, %v1128_v62, %v1143_v21  ;;  %v1148_v3 = vsel %vm1140_vm3, %v1131_v16, %v1147_v1 }
 0x10f   :  { %v1152_v57 = vsel %vm1140_vm3, %v1134_v26, %v1151_v4  ;;  %v844_v45 = vand.u32 2147483647, %v2401_v32  ;;  %v1063_v51 = vsel %vm1290_vm6, 0, %v1289_v7  ;;  %v1149_v48 = vsel %vm1139_vm0, %v1146_v53, %v1148_v3 }
 0x110   :  { %v1153_v52 = vsel %vm1139_vm0, %v1150_v9, %v1152_v57  ;;  %v953_v46 = vor.u32 %v952_v50, %v951_v38  ;;  %v1064_v34 = vsub.s32 32, %v1063_v51  ;;  %v1068_v42 = vsub.s32 4294967266, %v1063_v51 }
 0x111   :  { %v1145_v17 = vsel %vm1139_vm0, %v1142_v12, %v1144_v56  ;;  %vm407_vm7 = vcmp.eq.s32.totalorder %v2250_v49, 2  ;;  %v2450_v30 = vmul.u32.u64.low %v2437_v24, %v1153_v52  ;;  %v2451_v62 = vmul.u32.u64.high %v2437_v24, %v1153_v52, %v2450_v30 }
 0x112   :  { %v2454_v16 = vmul.u32.u64.low %v2437_v24, %v1149_v48  ;;  %v2455_v32 = vmul.u32.u64.high %v2437_v24, %v1149_v48, %v2454_v16  ;;  %vm404_vm8 = vcmp.eq.s32.totalorder %v2250_v49, 0  ;;  %v957_v26 = vor.u32 4788187, %v956_v28 }
 0x113   :  { %v1065_v38 = vshll.u32 %v2407_v13, %v1063_v51  ;;  %v1066_v39 = vshrl.u32 %v1048_v25, %v1064_v34  ;;  %v1069_v50 = vadd.s32 127, %v1068_v42  ;;  %v2715_v44 = vstv %s1847_s22 }
 0x114   :  { %v185_v0 = vmul.f32 %v2715_v44, %v2260_v43  ;;  %v296_v40 = vsel %vm289_vm14, %v2384_v22, %v2349_v19  ;;  %v515_v7 = vadd.s32 3, %v511_v2  ;;  %vm652_vm10 = vcmp.lt.s32.totalorder %v1818_v47, 0 }
 0x115   :  { %v622_v28 = vsub.s32 4, %v1996_v29  ;;  %v624_v13 = vsel %vm2429_vm15, %v1675_v14, %v2393_v15  ;;  %v1070_v43 = vshll.u32 %v1069_v50, 23  ;;  %v1161_v25 = vmul.u32 %v2437_v24, %v1145_v17 }
 0x116   :  { %v734_v31 = vxor.u32 2147483648, %v2395_v63  ;;  %v847_v55 = vmul.f32 %v846_v5, %v844_v45  ;;  %vm1163_vm9 = vc.u32 %v2451_v62, %v2454_v16  ;;  %v1164_v19 = vadd.s32 1, %v2455_v32 }
 0x117   :  { %v958_v61 = vand.u32 2147483647, %v957_v26  ;;  %v960_v22 = vcvt.s32.f32 %v953_v46  ;;  %v1067_v2 = vor.u32 %v1066_v39, %v1065_v38  ;;  %v1071_v12 = vor.u32 4788187, %v1070_v43 }
 0x118   :  { %v297_v15 = vsel %vm286_vm4, nan, %v296_v40  ;;  %v2486_v53 = vand.u32 3, %v515_v7  ;;  %v2716_v24 = vand.u32 2147483647, %v1818_v47  ;;  %v1165_v18 = vsel %vm1163_vm9, %v1164_v19, %v2455_v32 }
 0x119   :  { %vm400_vm1 = vweird.f32 %v1563_v60  ;;  %v405_v5 = vxor.u32 2147483648, %v2435_v59  ;;  %v408_v1 = vxor.u32 2147483648, %v2425_v20  ;;  %1365 = vcosq.f32 %v624_v13 }
 0x11a   :  { %vm2490_vm12 = vcmp.le.f32.partialorder %v2716_v24, 0.7853982  ;;  %v1166_v10 = vadd.s32 %v1165_v18, %v1161_v25  ;;  %v623_v9 = vsel %vm538_vm11, %v622_v28, %v1996_v29  ;;  %1367 = vsinq.f32 %v624_v13 }
 0x11b   :  { %v735_v4 = vsel %vm652_vm10, %v734_v31, %v2395_v63  ;;  %v848_v56 = vxor.u32 2147483648, %v847_v55  ;;  %v961_v3 = vmul.f32 %v960_v22, %v958_v61  ;;  %v1072_v57 = vand.u32 2147483647, %v1071_v12 }
 0x11c   :  { %v1074_v45 = vcvt.s32.f32 %v1067_v2  ;;  %v1167_v51 = vadd.s32 536870912, %v1166_v10  ;;  %v2719_v48 = vstv %s2673_s3  ;;  %v2720_v46 = vstv %s1937_s26  ;;  %s2589_s3 = sld [smem:[#allocation9 + $0x4]] }
 0x11d   :  { %v186_v52 = vadd.f32 %v185_v0, %v2719_v48  ;;  %v299_v34 = vmul.f32 %v2720_v46, %v297_v15  ;;  %vm403_vm13 = vcmp.lt.s32.totalorder %v2250_v49, 2  ;;  %vm766_vm11 = vcmp.lt.s32.totalorder %v1917_v37, 0 }
 0x11e   :  { %v409_v29 = vsel %vm407_vm7, %v408_v1, %v2435_v59  ;;  %vm517_vm14 = vcmp.lt.s32.totalorder %v2486_v53, 2  ;;  %v625_v63 = vsel %vm2429_vm15, 0, %v623_v9  ;;  %v2518_v42 = vshrl.u32 %v1167_v51, 30 }
 0x11f   :  { %v406_v17 = vsel %vm404_vm8, %v2425_v20, %v405_v5  ;;  %v736_v30 = vsub.s32 4, %v2145_v35  ;;  %v738_v32 = vsel %vm2490_vm12, %v1818_v47, %v735_v4  ;;  %v2721_v26 = vand.u32 2147483647, %v1917_v37 }
 0x120   :  { %v849_v58 = vsel %vm766_vm11, %v848_v56, %v847_v55  ;;  %v962_v38 = vxor.u32 2147483648, %v961_v3  ;;  %v1075_v39 = vmul.f32 %v1074_v45, %v1072_v57  ;;  %v1169_v50 = vshll.u32 %v2518_v42, 30  ;;  %v2731_v56 = vld [vmem:[#allocation16_spill] sm:$0xff] }
 0x121   :  { %vm2529_vm2 = vcmp.le.f32.partialorder %v2721_v26, 0.7853982  ;;  %vm514_vm15 = vweird.f32 %v1608_v54  ;;  %vm521_vm0 = vcmp.eq.s32.totalorder %v2486_v53, 2  ;;  %v522_v20 = vxor.u32 2147483648, %v2440_v41 }
 0x122   :  { %v629_v44 = vadd.s32 3, %v625_v63  ;;  %vm880_vm3 = vcmp.lt.s32.totalorder %v2086_v36, 0  ;;  %v410_v0 = vsel %vm403_vm13, %v406_v17, %v409_v29  ;;  %v519_v40 = vxor.u32 2147483648, %v2442_v23 }
 0x123   :  { %1369 = vcosq.f32 %v738_v32  ;;  %v2543_v7 = vsub.s32 %v1166_v10, %v1169_v50  ;;  %vm518_vm4 = vcmp.eq.s32.totalorder %v2486_v53, 0  ;;  %v737_v28 = vsel %vm652_vm10, %v736_v30, %v2145_v35 }
 0x124   :  { %1371 = vsinq.f32 %v738_v32  ;;  %v852_v13 = vsel %vm2529_vm2, %v1917_v37, %v849_v58  ;;  %v2724_v43 = vand.u32 2147483647, %v2086_v36  ;;  %v963_v25 = vsel %vm880_vm3, %v962_v38, %v961_v3 }
 0x125   :  { %v1076_v31 = vxor.u32 2147483648, %v1075_v39  ;;  %v1172_v55 = vsub.s32 0, %v2543_v7  ;;  %v411_v35 = vsel %vm400_vm1, nan, %v410_v0  ;;  %v523_v19 = vsel %vm521_vm0, %v522_v20, %v2442_v23 }
 0x126   :  { %vm2554_vm5 = vcmp.le.f32.partialorder %v2724_v43, 0.7853982  ;;  %v2566_v61 = vand.u32 3, %v629_v44  ;;  %vm994_vm6 = vcmp.lt.s32.totalorder %v2181_v8, 0  ;;  %v520_v22 = vsel %vm518_vm4, %v2440_v41, %v519_v40  ;;  %v1366_v15 = vpop.eup %1365 }
 0x127   :  { %v850_v2 = vsub.s32 4, %v2153_v11  ;;  %1373 = vcosq.f32 %v852_v13  ;;  %v1295_v12 = vmin.u32 %v1172_v55, %v2543_v7  ;;  %v300_v24 = vadd.f32 %v299_v34, %v186_v52  ;;  %v1368_v18 = vpop.eup %1367 }
 0x128   :  { %v739_v60 = vsel %vm2490_vm12, 0, %v737_v28  ;;  %1375 = vsinq.f32 %v852_v13  ;;  %v966_v23 = vsel %vm2554_vm5, %v2086_v36, %v963_v25  ;;  %v2727_v5 = vstv %s1942_s1 }
 0x129   :  { %v413_v1 = vmul.f32 %v2727_v5, %v411_v35  ;;  %v2728_v41 = vand.u32 2147483647, %v2181_v8  ;;  %v1077_v9 = vsel %vm994_vm6, %v1076_v31, %v1075_v39  ;;  %v1174_v4 = vclz %v1295_v12 }
 0x12a   :  { %v524_v21 = vsel %vm517_vm14, %v520_v22, %v523_v19  ;;  %vm631_vm8 = vcmp.lt.s32.totalorder %v2566_v61, 2  ;;  %vm632_vm10 = vcmp.eq.s32.totalorder %v2566_v61, 0  ;;  %v964_v3 = vsub.s32 4, %v2731_v56 }
 0x12b   :  { %vm2581_vm7 = vcmp.le.f32.partialorder %v2728_v41, 0.7853982  ;;  %v743_v57 = vadd.s32 3, %v739_v60  ;;  %v851_v45 = vsel %vm766_vm11, %v850_v2, %v2153_v11  ;;  %1377 = vcosq.f32 %v966_v23 }
 0x12c   :  { %v1296_v51 = vadd.s32 4294967294, %v1174_v4  ;;  %v633_v48 = vxor.u32 2147483648, %v1368_v18  ;;  %v636_v52 = vxor.u32 2147483648, %v1366_v15  ;;  %1379 = vsinq.f32 %v966_v23 }
 0x12d   :  { %v1080_v53 = vsel %vm2581_vm7, %v2181_v8, %v1077_v9  ;;  %v525_v46 = vsel %vm514_vm15, nan, %v524_v21  ;;  %vm635_vm9 = vcmp.eq.s32.totalorder %v2566_v61, 2  ;;  %v1162_v34 = vadd.s32 %v2454_v16, %v2451_v62 }
 0x12e   :  { %vm1297_vm12 = vcmp.lt.s32.totalorder %v1296_v51, 0  ;;  %v853_v11 = vsel %vm2529_vm2, 0, %v851_v45  ;;  %v965_v29 = vsel %vm880_vm3, %v964_v3, %v2731_v56  ;;  %v1078_v63 = vsub.s32 4, %v2386_v27 }
 0x12f   :  { %v1177_v17 = vsel %vm1297_vm12, 0, %v1296_v51  ;;  %1381 = vcosq.f32 %v1080_v53  ;;  %v634_v32 = vsel %vm632_vm10, %v1366_v15, %v633_v48  ;;  %v637_v26 = vsel %vm635_vm9, %v636_v52, %v1368_v18 }
 0x130   :  { %v1178_v54 = vsub.s32 32, %v1177_v17  ;;  %v1179_v30 = vshll.u32 %v2543_v7, %v1177_v17  ;;  %v1182_v62 = vsub.s32 4294967266, %v1177_v17  ;;  %v1370_v16 = vpop.eup %1369  ;;  %v744_v59 = vand.u32 3, %v743_v57 }
 0x131   :  { %1383 = vsinq.f32 %v1080_v53  ;;  %v1372_v58 = vpop.eup %1371  ;;  %v857_v38 = vadd.s32 3, %v853_v11  ;;  %v967_v39 = vsel %vm2554_vm5, 0, %v965_v29  ;;  %v414_v44 = vadd.f32 %v413_v1, %v300_v24 }
 0x132   :  { %v1180_v50 = vshrl.u32 %v1162_v34, %v1178_v54  ;;  %v1183_v20 = vadd.s32 127, %v1182_v62  ;;  %v2732_v0 = vstv %s2068_s28  ;;  %vm628_vm1 = vweird.f32 %v1675_v14 }
 0x133   :  { %v527_v40 = vmul.f32 %v2732_v0, %v525_v46  ;;  %v640_v7 = vstv %s2589_s3  ;;  %v750_v28 = vxor.u32 2147483648, %v1370_v16  ;;  %v1079_v13 = vsel %vm994_vm6, %v1078_v63, %v2386_v27 }
 0x134   :  { %v1181_v43 = vor.u32 %v1180_v50, %v1179_v30  ;;  %v1184_v25 = vshll.u32 %v1183_v20, 23  ;;  %v1374_v31 = vpop.eup %1373  ;;  %v638_v49 = vsel %vm631_vm8, %v634_v32, %v637_v26  ;;  %v747_v55 = vxor.u32 2147483648, %v1372_v58 }
 0x135   :  { %vm749_vm13 = vcmp.eq.s32.totalorder %v744_v59, 2  ;;  %v971_v35 = vadd.s32 3, %v967_v39  ;;  %v1376_v19 = vpop.eup %1375  ;;  %vm746_vm11 = vcmp.eq.s32.totalorder %v744_v59, 0  ;;  %v858_v22 = vand.u32 3, %v857_v38 }
 0x136   :  { %v1185_v2 = vor.u32 4788187, %v1184_v25  ;;  %v1188_v12 = vcvt.s32.f32 %v1181_v43  ;;  %v528_v15 = vadd.f32 %v527_v40, %v414_v44  ;;  %vm742_vm14 = vweird.f32 %v1818_v47 }
 0x137   :  { %v754_v24 = vstv %s2605_s9  ;;  %v1081_v27 = vsel %vm2581_vm7, 0, %v1079_v13  ;;  %v639_v60 = vsel %vm628_vm1, nan, %v638_v49  ;;  %vm745_vm2 = vcmp.lt.s32.totalorder %v744_v59, 2 }
 0x138   :  { %v751_v61 = vsel %vm749_vm13, %v750_v28, %v1372_v58  ;;  %v1186_v23 = vand.u32 2147483647, %v1185_v2  ;;  %v1378_v18 = vpop.eup %1377  ;;  %v748_v5 = vsel %vm746_vm11, %v1370_v16, %v747_v55  ;;  %v861_v1 = vxor.u32 2147483648, %v1376_v19 }
 0x139   :  { %v864_v41 = vxor.u32 2147483648, %v1374_v31  ;;  %v972_v9 = vand.u32 3, %v971_v35  ;;  %v1380_v4 = vpop.eup %1379  ;;  %vm860_vm15 = vcmp.eq.s32.totalorder %v858_v22, 0  ;;  %vm863_vm0 = vcmp.eq.s32.totalorder %v858_v22, 2 }
 0x13a   :  { %v1085_v21 = vadd.s32 3, %v1081_v27  ;;  %v1189_v56 = vmul.f32 %v1188_v12, %v1186_v23  ;;  %v641_v3 = vmul.f32 %v640_v7, %v639_v60  ;;  %vm859_vm3 = vcmp.lt.s32.totalorder %v858_v22, 2 }
 0x13b   :  { %vm1108_vm4 = vcmp.lt.s32.totalorder %v2311_v33, 0  ;;  %v1192_v14 = vsub.s32 4, %v2518_v42  ;;  %v752_v10 = vsel %vm745_vm2, %v748_v5, %v751_v61  ;;  %v978_v57 = vxor.u32 2147483648, %v1378_v18 }
 0x13c   :  { %vm2640_vm5 = vcmp.le.f32.partialorder %v1106_v6, 0.7853982  ;;  %v1190_v51 = vxor.u32 2147483648, %v1189_v56  ;;  %v1382_v48 = vpop.eup %1381  ;;  %v862_v52 = vsel %vm860_vm15, %v1374_v31, %v861_v1  ;;  %v865_v53 = vsel %vm863_vm0, %v864_v41, %v1376_v19 }
 0x13d   :  { %v975_v46 = vxor.u32 2147483648, %v1380_v4  ;;  %vm977_vm6 = vcmp.eq.s32.totalorder %v972_v9, 2  ;;  %vm856_vm7 = vweird.f32 %v1917_v37  ;;  %vm974_vm8 = vcmp.eq.s32.totalorder %v972_v9, 0 }
 0x13e   :  { %v1384_v34 = vpop.eup %1383  ;;  %v1086_v11 = vand.u32 3, %v1085_v21  ;;  %v1191_v29 = vsel %vm1108_vm4, %v1190_v51, %v1189_v56  ;;  %v642_v63 = vadd.f32 %v641_v3, %v528_v15  ;;  %v753_v6 = vsel %vm742_vm14, nan, %v752_v10 }
 0x13f   :  { %v1193_v17 = vsel %vm1108_vm4, %v1192_v14, %v2518_v42  ;;  %v1194_v54 = vsel %vm2640_vm5, %v2311_v33, %v1191_v29  ;;  %v866_v30 = vsel %vm859_vm3, %v862_v52, %v865_v53  ;;  %vm973_vm10 = vcmp.lt.s32.totalorder %v972_v9, 2 }
 0x140   :  { %v979_v62 = vsel %vm977_vm6, %v978_v57, %v1380_v4  ;;  %1385 = vcosq.f32 %v1194_v54  ;;  %v976_v16 = vsel %vm974_vm8, %v1378_v18, %v975_v46  ;;  %v1089_v32 = vxor.u32 2147483648, %v1384_v34 }
 0x141   :  { %v1092_v47 = vxor.u32 2147483648, %v1382_v48  ;;  %1387 = vsinq.f32 %v1194_v54  ;;  %v755_v26 = vmul.f32 %v754_v24, %v753_v6  ;;  %vm1088_vm9 = vcmp.eq.s32.totalorder %v1086_v11, 0 }
 0x142   :  { %vm1091_vm12 = vcmp.eq.s32.totalorder %v1086_v11, 2  ;;  %v1195_v42 = vsel %vm2640_vm5, 0, %v1193_v17  ;;  %v867_v59 = vsel %vm856_vm7, nan, %v866_v30  ;;  %v868_v58 = vstv %s2633_s10 }
 0x143   :  { %vm970_vm1 = vweird.f32 %v2086_v36  ;;  %v980_v38 = vsel %vm973_vm10, %v976_v16, %v979_v62  ;;  %vm1087_vm13 = vcmp.lt.s32.totalorder %v1086_v11, 2  ;;  %v1090_v39 = vsel %vm1088_vm9, %v1382_v48, %v1089_v32 }
 0x144   :  { %v1093_v50 = vsel %vm1091_vm12, %v1092_v47, %v1384_v34  ;;  %v1199_v20 = vadd.s32 3, %v1195_v42  ;;  %v756_v44 = vadd.f32 %v755_v26, %v642_v63  ;;  %v869_v0 = vmul.f32 %v868_v58, %v867_v59 }
 0x145   :  { %v981_v40 = vsel %vm970_vm1, nan, %v980_v38  ;;  %v982_v7 = vstv %s2649_s11  ;;  %vm1084_vm11 = vweird.f32 %v2181_v8  ;;  %v1094_v28 = vsel %vm1087_vm13, %v1090_v39, %v1093_v50 }
 0x146   :  { %v1200_v13 = vand.u32 3, %v1199_v20  ;;  %v870_v37 = vadd.f32 %v869_v0, %v756_v44  ;;  %v983_v43 = vmul.f32 %v982_v7, %v981_v40  ;;  %v1095_v25 = vsel %vm1084_vm11, nan, %v1094_v28 }
 0x147   :  { %v1096_v31 = vstv %s1284_s12  ;;  %vm1198_vm0 = vweird.f32 %v2311_v33  ;;  %v1210_v12 = vstv %s1291_s13 }
 0x148   :  { %vm1205_vm14 = vcmp.eq.s32.totalorder %v1200_v13, 2  ;;  %v984_v55 = vadd.f32 %v983_v43, %v870_v37  ;;  %v1097_v35 = vmul.f32 %v1096_v31, %v1095_v25  ;;  %vm1202_vm2 = vcmp.eq.s32.totalorder %v1200_v13, 0 }
 0x149   :  { %vm1201_vm15 = vcmp.lt.s32.totalorder %v1200_v13, 2 }
 0x14a   :  { %v1098_v15 = vadd.f32 %v1097_v35, %v984_v55 }
 0x14d   :  { %v1386_v49 = vpop.eup %1385 }
 0x14e   :  { %v1388_v36 = vpop.eup %1387  ;;  %v1206_v19 = vxor.u32 2147483648, %v1386_v49 }
 0x14f   :  { %v1203_v22 = vxor.u32 2147483648, %v1388_v36 }
 0x150   :  { %v1207_v2 = vsel %vm1205_vm14, %v1206_v19, %v1388_v36 }
 0x151   :  { %v1204_v8 = vsel %vm1202_vm2, %v1386_v49, %v1203_v22 }
 0x152   :  { %v1208_v24 = vsel %vm1201_vm15, %v1204_v8, %v1207_v2 }
 0x153   :  { %v1209_v27 = vsel %vm1198_vm0, nan, %v1208_v24 }
 0x154   :  { %v1211_v60 = vmul.f32 %v1210_v12, %v1209_v27 }
 0x156   :  { %v1212_v61 = vadd.f32 %v1211_v60, %v1098_v15 }
 0x158   :  { %1213 = vst [vmem:[#allocation11] sm:$0xff] %v1212_v61 }
 0x159   :  { %1457 = shalt.err (!%p1454_p10)
}
 0x15a   :  { %1223 = dma.vmem_to_hbm [thread:$0]  %s1221_s14, 128, %s2675_s5, [#allocation5]  }
 0x15b   :  { %1472 = dma.done.wait [#allocation5], 128  }
 0x15c   :  { %1473 = vsyncadd [#allocation5], 4294967168 }
 0x15d   :  { %1227 = vsyncpa [#allocation4], 1 }
 0x15e   :  { %1228 = vsyncpa [#allocation5], 1 }
 0x15f   :  { %1229 = vsyncpa [#allocation6], 1 }
 0x160   :  { %1230 = vsyncpa [#allocation8], 1 }

</bundles_post_ra>
